<compile_context>
chip_gen: v5e
topology: v5e:2x2
jax: 0.10.0
libtpu: 0.0.40
codegen_flags: <defaults>
</compile_context>

<pallas_src>
import math

import jax
import jax.numpy as jnp
from jax.experimental import pallas as pl
from jax.experimental.pallas import tpu as pltpu


def _round_up(x, m):
    return ((x + m - 1) // m) * m


def _largest_divisor_leq(n, cap):
    for d in range(min(n, cap), 0, -1):
        if n % d == 0:
            return d
    return 1


def _largest_128_multiple_divisor(n, cap):
    """Largest multiple of 128 that divides n (n % 128 == 0) and is <= cap."""
    best = 128
    cand = 256
    while cand <= cap:
        if n % cand == 0:
            best = cand
        cand += 128
    return best


def _soft_attention_kernel(q_ref, k_ref, ni_ref, nj_ref, v_ref, o_ref, acc_ref):
    # q_ref:  (TB, TQ, D)   scaled query tile  (q * sqrt(2s))
    # k_ref:  (TB, TK, D)   scaled key tile    (same underlying array as q)
    # ni_ref: (TB, TQ, 1)   s*||q_i||^2 for this query tile (f32, precomputed)
    # nj_ref: (TB, 1, TK)   s*||q_j||^2 for this key tile   (f32, precomputed)
    # v_ref:  (TB, TK, Dv)  value tile
    # o_ref:  (TB, TQ, Dv)  output tile
    # acc_ref:(TB, TQ, Dv)  f32 accumulator, resident across the k grid axis
    k = pl.program_id(2)

    @pl.when(k == 0)
    def _():
        acc_ref[...] = jnp.zeros_like(acc_ref)

    # (sqrt(2s) q_i) . (sqrt(2s) q_j) on the MXU, f32 accumulation.
    qq = jnp.einsum("bqd,bkd->bqk", q_ref[...], k_ref[...],
                    preferred_element_type=jnp.float32)          # (TB, TQ, TK)

    # exp argument = -s*||q_i - q_j||^2; clamp at 0 (squared distance >= 0,
    # cancellation in the expansion can leave tiny positives).
    arg = jnp.minimum(qq - ni_ref[...] - nj_ref[...], 0.0)

    # exp in the value dtype: the score feeds a matmul against v, so for bf16
    # inputs this keeps the full-rate MXU path and (on v6e/v7x) the bf16 EUP.
    if v_ref.dtype == jnp.float32:
        score = jnp.exp(arg)
    else:
        score = jnp.exp(arg.astype(v_ref.dtype))

    # Keep the fused accumulate (maps to MRB in-place accumulation on v7x).
    acc_ref[...] += jnp.einsum("bqk,bkd->bqd", score, v_ref[...],
                               preferred_element_type=jnp.float32)

    @pl.when(k == pl.num_programs(2) - 1)
    def _():
        o_ref[...] = acc_ref[...].astype(o_ref.dtype)


def soft_attention(q, v, *, compute_dtype=None, vmem_limit_bytes=None):
    """Softmax-free attention.  q: (B,H,L,D), v: (B,H,L,Dv) -> (B,H,L,Dv)."""
    B, H, L, D = q.shape
    Dv = v.shape[-1]
    BH = B * H
    s = 1.0 / (2.0 * math.sqrt(D))         # |scale|

    q_f = q.reshape(BH, L, D)
    v_f = v.reshape(BH, L, Dv)

    # Pad L to a 128 quantum (lane width) -> lane-dense score tiles, padding
    # waste capped well below the previous 256-block rounding.
    Lp = _round_up(L, 128)
    if Lp != L:
        pad = ((0, 0), (0, Lp - L), (0, 0))
        q_f = jnp.pad(q_f, pad)
        v_f = jnp.pad(v_f, pad)            # zero v rows => padded keys add 0

    # Fold the scale into the operands (O(L*D) wrapper work replaces O(L^2)
    # per-element multiplies and per-step norm recomputation in the kernel).
    q32 = q_f.astype(jnp.float32) * math.sqrt(2.0 * s)
    norms = 0.5 * jnp.sum(q32 * q32, axis=-1)          # s*||q||^2, (BH, Lp) f32
    norms_i = norms[:, :, None]                        # (BH, Lp, 1)
    norms_j = norms[:, None, :]                        # (BH, 1, Lp)

    mm_dtype = compute_dtype if compute_dtype is not None else q.dtype
    q_s = q32.astype(mm_dtype)
    v_f = v_f.astype(mm_dtype)

    # Tile selection.  The working set is a few MiB at most (far under every
    # generation's VMEM budget), so grow tiles to amortize per-grid-step
    # overhead and reduce K/V HBM re-reads.
    if Lp == 128:
        TQ = TK = 128
        cap = max(1, 512 // Lp)                        # heads per grid step
        if BH >= 2:
            cap = min(cap, BH // 2)                    # keep >=2 steps on the
        TB = _largest_divisor_leq(BH, max(cap, 1))     # leading parallel axis (v7x 2-TC)
    else:
        TQ = _largest_128_multiple_divisor(Lp, 512)    # larger q tile: fewer K/V re-reads
        TK = _largest_128_multiple_divisor(Lp, 256)
        TB = 1

    grid = (BH // TB, Lp // TQ, Lp // TK)

    out = pl.pallas_call(
        _soft_attention_kernel,
        out_shape=jax.ShapeDtypeStruct((BH, Lp, Dv), q.dtype),
        grid_spec=pltpu.PrefetchScalarGridSpec(
            num_scalar_prefetch=0,
            grid=grid,
            in_specs=[
                pl.BlockSpec((TB, TQ, D), lambda b, i, k: (b, i, 0)),   # queries
                pl.BlockSpec((TB, TK, D), lambda b, i, k: (b, k, 0)),   # keys (= q)
                pl.BlockSpec((TB, TQ, 1), lambda b, i, k: (b, i, 0)),   # s||q_i||^2
                pl.BlockSpec((TB, 1, TK), lambda b, i, k: (b, 0, k)),   # s||q_j||^2
                pl.BlockSpec((TB, TK, Dv), lambda b, i, k: (b, k, 0)),  # values
            ],
            out_specs=pl.BlockSpec((TB, TQ, Dv), lambda b, i, k: (b, i, 0)),
            scratch_shapes=[pltpu.VMEM((TB, TQ, Dv), jnp.float32)],
        ),
        compiler_params=pltpu.CompilerParams(
            dimension_semantics=("parallel", "parallel", "arbitrary"),
            vmem_limit_bytes=vmem_limit_bytes,
        ),
    )(q_s, q_s, norms_i, norms_j, v_f)

    if Lp != L:
        out = out[:, :L, :]
    return out.reshape(B, H, L, Dv)


def _soft_attention_ref(q, v):
    # Pure-JAX reference mirroring the PyTorch forward exactly.
    d_tensor = q.shape[-1]
    diff = q[:, :, :, None, :] - q[:, :, None, :, :]            # (B,H,L,L,D)
    sq_l2 = jnp.sum(diff ** 2, axis=-1)                         # (B,H,L,L)
    score = jnp.exp(-1.0 / (2.0 * math.sqrt(d_tensor)) * sq_l2)
    return jnp.einsum("bhij,bhjd->bhid", score, v)


if __name__ == "__main__":
    key = jax.random.PRNGKey(0)
    kq, kv, kq2, kv2 = jax.random.split(key, 4)

    # Small shape: single 128-padded L tile, several heads batched per grid step.
    B, H, L, D = 2, 4, 8, 32
    q = jax.random.normal(kq, (B, H, L, D), dtype=jnp.float32)
    v = jax.random.normal(kv, (B, H, L, D), dtype=jnp.float32)
    out = jax.block_until_ready(soft_attention(q, v))
    ref = _soft_attention_ref(q, v)
    assert out.shape == ref.shape
    assert jnp.allclose(out, ref, atol=1e-4, rtol=1e-4), (
        f"max abs err {jnp.max(jnp.abs(out - ref))}"
    )

    # Larger, ragged L: multi k-tile accumulation with 128-quantum padding
    # (L=260 -> Lp=384, TQ=384, TK=128).
    B2, H2, L2, D2 = 1, 2, 260, 32
    q2 = jax.random.normal(kq2, (B2, H2, L2, D2), dtype=jnp.float32)
    v2 = jax.random.normal(kv2, (B2, H2, L2, D2), dtype=jnp.float32)
    out2 = jax.block_until_ready(soft_attention(q2, v2))
    ref2 = _soft_attention_ref(q2, v2)
    assert out2.shape == ref2.shape
    assert jnp.allclose(out2, ref2, atol=1e-3, rtol=1e-3), (
        f"max abs err {jnp.max(jnp.abs(out2 - ref2))}"
    )

    # Exercise the bf16 compute-dtype knob (full-rate MXU matmuls, bf16 exp).
    out3 = jax.block_until_ready(
        soft_attention(q, v, compute_dtype=jnp.bfloat16))
    assert jnp.allclose(out3, ref, atol=1e-1, rtol=1e-1), (
        f"max abs err {jnp.max(jnp.abs(out3 - ref))}"
    )

    print("KERNEL_OK")
</pallas_src>

<mosaic_0001>
module attributes {stable_mosaic.version = 11 : i64} {
  func.func @_soft_attention_kernel(%arg0: i32, %arg1: i32, %arg2: i32, %arg3: memref<4x128x32xf32, #tpu.memory_space<vmem>>, %arg4: memref<4x128x32xf32, #tpu.memory_space<vmem>>, %arg5: memref<4x128x1xf32, #tpu.memory_space<vmem>>, %arg6: memref<4x1x128xf32, #tpu.memory_space<vmem>>, %arg7: memref<4x128x32xf32, #tpu.memory_space<vmem>>, %arg8: memref<4x128x32xf32, #tpu.memory_space<vmem>>, %arg9: memref<4x128x32xf32, #tpu.memory_space<vmem>>) attributes {dimension_semantics = [#tpu.dimension_semantics<parallel>, #tpu.dimension_semantics<parallel>, #tpu.dimension_semantics<arbitrary>], iteration_bounds = array<i64: 2, 1, 1>, scalar_prefetch = 0 : i64, scratch_operands = 1 : i64, tpu.core_type = #tpu.core_type<tc>, window_params = [{transform_indices = @transform_0, window_bounds = array<i64: 4, 128, 32>}, {transform_indices = @transform_1, window_bounds = array<i64: 4, 128, 32>}, {transform_indices = @transform_2, window_bounds = array<i64: 4, 128, 1>}, {transform_indices = @transform_3, window_bounds = array<i64: 4, 1, 128>}, {transform_indices = @transform_4, window_bounds = array<i64: 4, 128, 32>}, {transform_indices = @transform_5, window_bounds = array<i64: 4, 128, 32>}]} {
    %c0_i32 = arith.constant 0 : i32
    %0 = arith.cmpi eq, %arg2, %c0_i32 : i32
    %1 = arith.extui %0 : i1 to i32
    %c0_i32_0 = arith.constant 0 : i32
    %2 = arith.cmpi ne, %1, %c0_i32_0 : i32
    scf.if %2 {
      %cst_25 = arith.constant 0.000000e+00 : f32
      %23 = vector.broadcast %cst_25 : f32 to vector<4x128x32xf32>
      %c0_26 = arith.constant 0 : index
      %c0_27 = arith.constant 0 : index
      %c0_28 = arith.constant 0 : index
      %24 = vector.load %arg9[%c0_26, %c0_27, %c0_28] : memref<4x128x32xf32, #tpu.memory_space<vmem>>, vector<4x128x32xf32>
      tpu.vector_store %arg9[%c0_26, %c0_27, %c0_28], %23 {strides = array<i32>} : memref<4x128x32xf32, #tpu.memory_space<vmem>>, vector<4x128x32xf32>,
    } else {
    }
    %c0 = arith.constant 0 : index
    %c0_1 = arith.constant 0 : index
    %c0_2 = arith.constant 0 : index
    %3 = vector.load %arg3[%c0, %c0_1, %c0_2] : memref<4x128x32xf32, #tpu.memory_space<vmem>>, vector<4x128x32xf32>
    %c0_3 = arith.constant 0 : index
    %c0_4 = arith.constant 0 : index
    %c0_5 = arith.constant 0 : index
    %4 = vector.load %arg4[%c0_3, %c0_4, %c0_5] : memref<4x128x32xf32, #tpu.memory_space<vmem>>, vector<4x128x32xf32>
    "tpu.trace_start"() <{level = 10 : i32, message = "bqd,bkd->bqk"}> : () -> ()
    %cst = arith.constant dense<0.000000e+00> : vector<4x128x128xf32>
    %5 = tpu.matmul %3, %4, %cst {dimension_numbers = #tpu.dot_dimension_numbers<[2], [2], [1], [1], [0, 0, 0, 1, 1, 1], [0], [0]>} : vector<4x128x32xf32>, vector<4x128x32xf32>, vector<4x128x128xf32> -> vector<4x128x128xf32>
    "tpu.trace_stop"() : () -> ()
    %c0_6 = arith.constant 0 : index
    %c0_7 = arith.constant 0 : index
    %c0_8 = arith.constant 0 : index
    %6 = vector.load %arg5[%c0_6, %c0_7, %c0_8] : memref<4x128x1xf32, #tpu.memory_space<vmem>>, vector<4x128x1xf32>
    %7 = vector.broadcast %6 : vector<4x128x1xf32> to vector<4x128x128xf32>
    %8 = arith.subf %5, %7 : vector<4x128x128xf32>
    %c0_9 = arith.constant 0 : index
    %c0_10 = arith.constant 0 : index
    %c0_11 = arith.constant 0 : index
    %9 = vector.load %arg6[%c0_9, %c0_10, %c0_11] : memref<4x1x128xf32, #tpu.memory_space<vmem>>, vector<4x1x128xf32>
    %10 = vector.broadcast %9 : vector<4x1x128xf32> to vector<4x128x128xf32>
    %11 = arith.subf %8, %10 : vector<4x128x128xf32>
    %cst_12 = arith.constant 0.000000e+00 : f32
    %12 = vector.broadcast %cst_12 : f32 to vector<4x128x128xf32>
    %13 = arith.minimumf %11, %12 : vector<4x128x128xf32>
    %14 = math.exp %13 : vector<4x128x128xf32>
    %c0_13 = arith.constant 0 : index
    %c0_14 = arith.constant 0 : index
    %c0_15 = arith.constant 0 : index
    %15 = vector.load %arg9[%c0_13, %c0_14, %c0_15] : memref<4x128x32xf32, #tpu.memory_space<vmem>>, vector<4x128x32xf32>
    %c0_16 = arith.constant 0 : index
    %c0_17 = arith.constant 0 : index
    %c0_18 = arith.constant 0 : index
    %16 = vector.load %arg7[%c0_16, %c0_17, %c0_18] : memref<4x128x32xf32, #tpu.memory_space<vmem>>, vector<4x128x32xf32>
    "tpu.trace_start"() <{level = 10 : i32, message = "bqk,bkd->bqd"}> : () -> ()
    %cst_19 = arith.constant dense<0.000000e+00> : vector<4x128x32xf32>
    %17 = tpu.matmul %14, %16, %cst_19 {dimension_numbers = #tpu.dot_dimension_numbers<[2], [1], [1], [2], [0, 0, 0, 1, 1, 2], [0], [0]>} : vector<4x128x128xf32>, vector<4x128x32xf32>, vector<4x128x32xf32> -> vector<4x128x32xf32>
    "tpu.trace_stop"() : () -> ()
    %18 = arith.addf %15, %17 : vector<4x128x32xf32>
    %c0_20 = arith.constant 0 : index
    %c0_21 = arith.constant 0 : index
    %c0_22 = arith.constant 0 : index
    %19 = vector.load %arg9[%c0_20, %c0_21, %c0_22] : memref<4x128x32xf32, #tpu.memory_space<vmem>>, vector<4x128x32xf32>
    tpu.vector_store %arg9[%c0_20, %c0_21, %c0_22], %18 {strides = array<i32>} : memref<4x128x32xf32, #tpu.memory_space<vmem>>, vector<4x128x32xf32>,
    %c0_i32_23 = arith.constant 0 : i32
    %20 = arith.cmpi eq, %arg2, %c0_i32_23 : i32
    %21 = arith.extui %20 : i1 to i32
    %c0_i32_24 = arith.constant 0 : i32
    %22 = arith.cmpi ne, %21, %c0_i32_24 : i32
    scf.if %22 {
      %c0_25 = arith.constant 0 : index
      %c0_26 = arith.constant 0 : index
      %c0_27 = arith.constant 0 : index
      %23 = vector.load %arg9[%c0_25, %c0_26, %c0_27] : memref<4x128x32xf32, #tpu.memory_space<vmem>>, vector<4x128x32xf32>
      %c0_28 = arith.constant 0 : index
      %c0_29 = arith.constant 0 : index
      %c0_30 = arith.constant 0 : index
      %24 = vector.load %arg8[%c0_28, %c0_29, %c0_30] : memref<4x128x32xf32, #tpu.memory_space<vmem>>, vector<4x128x32xf32>
      tpu.vector_store %arg8[%c0_28, %c0_29, %c0_30], %23 {strides = array<i32>} : memref<4x128x32xf32, #tpu.memory_space<vmem>>, vector<4x128x32xf32>,
    } else {
    }
    return
  }
  func.func @transform_0(%arg0: i32, %arg1: i32, %arg2: i32) -> (i32, i32, i32) {
    %c0_i32 = arith.constant 0 : i32
    %c0_i32_0 = arith.constant 0 : i32
    return %arg0, %arg1, %c0_i32 : i32, i32, i32
  }
  func.func @transform_1(%arg0: i32, %arg1: i32, %arg2: i32) -> (i32, i32, i32) {
    %c0_i32 = arith.constant 0 : i32
    %c0_i32_0 = arith.constant 0 : i32
    return %arg0, %arg2, %c0_i32 : i32, i32, i32
  }
  func.func @transform_2(%arg0: i32, %arg1: i32, %arg2: i32) -> (i32, i32, i32) {
    %c0_i32 = arith.constant 0 : i32
    %c0_i32_0 = arith.constant 0 : i32
    return %arg0, %arg1, %c0_i32 : i32, i32, i32
  }
  func.func @transform_3(%arg0: i32, %arg1: i32, %arg2: i32) -> (i32, i32, i32) {
    %c0_i32 = arith.constant 0 : i32
    %c0_i32_0 = arith.constant 0 : i32
    return %arg0, %c0_i32, %arg2 : i32, i32, i32
  }
  func.func @transform_4(%arg0: i32, %arg1: i32, %arg2: i32) -> (i32, i32, i32) {
    %c0_i32 = arith.constant 0 : i32
    %c0_i32_0 = arith.constant 0 : i32
    return %arg0, %arg2, %c0_i32 : i32, i32, i32
  }
  func.func @transform_5(%arg0: i32, %arg1: i32, %arg2: i32) -> (i32, i32, i32) {
    %c0_i32 = arith.constant 0 : i32
    %c0_i32_0 = arith.constant 0 : i32
    return %arg0, %arg1, %c0_i32 : i32, i32, i32
  }
}

</mosaic_0001>

<bundles_post_ra>
// kernel: tpu_custom_call.1
= control target key start
LH: loop header
LB: loop body
LE: loop exit
PB: predicated region body
PF: predicated region fallthrough
CT: control target
= control target key end

     0   :  { %s3177_s18 = smov 0   ;;  %s3179_s19 = smov 0   ;;  %s4199_s0 = inlined_call_operand.vmem [shape: f32[8,128,32], index: 0, kind: input, shape index: {}]   ;;  %s4200_s1 = inlined_call_operand.vmem [shape: f32[8,128,32], index: 1, kind: input, shape index: {}]   ;;  %s4201_s2 = inlined_call_operand.vmem [shape: f32[8,128,1], index: 2, kind: input, shape index: {}]   ;;  %s4202_s3 = inlined_call_operand.vmem [shape: f32[8,1,128], index: 3, kind: input, shape index: {}]   ;;  %s4203_s4 = inlined_call_operand.vmem [shape: f32[8,128,32], index: 4, kind: input, shape index: {}]   ;;  %s4204_s5 = inlined_call_operand.vmem [shape: f32[8,128,32], index: 5, kind: output, shape index: {}]  }
   0x1   :  { %s3181_s20 = smov 0  }
   0x2 LB: > { %s34_s21 = sadd.s32 1, %s3139_s19  ;;  %p2804_p0 = scmp.ge.s32.totalorder %s3143_s20, 1  ;;  %s3143_s20 = sphi %s3181_s20, %s15_s20   ;;  %s3139_s19 = sphi %s3179_s19, %s4206_s19   ;;  %s3135_s18 = sphi %s3177_s18, %s4205_s18  }
   0x3   : > { %p36_p1 = scmp.ge.s32.totalorder %s34_s21, 2  ;;  %p289_p2 = scmp.lt.s32.totalorder %s3143_s20, 3 }
   0x5   : > { %s4208_s21 = smov (%p36_p1, %s34_s21), 0  ;;  %p290_p3 = pnand %p2804_p0, %p289_p2 }
   0x6   : > { %s2805_s22 = sshll.u32 (!%p290_p3), %s3135_s18, 2 }
   0x7   : > { %293 = sbr.rel (%p290_p3) target bundleno = 493 (0x1ed), region = 40  ;;  %p366_p4 = scmp.lt.s32.totalorder (!%p290_p3), %s2805_s22, 7 }
   0xc   : > { %v3145_v0 = vmov 0   ;;  %s4210_s22 = smov (!%p366_p4, %s2805_s22), 7  ;;  %vm436_vm0 = vcmask 261120  }
   0xd   : > { %2984 = vset.pattern.permute.xlu2 %v3145_v0  ;;  %2983 = vset.pattern.permute.xlu1 %v3145_v0  ;;  %s3198_s23 = sshll.u32 %s4210_s22, 7  ;;  %s3382_s13 = scalar_lea.vmem %s4202_s3, %s4210_s22 }
   0xe   : > { %2982 = vset.pattern.permute.xlu0 %v3145_v0  ;;  %s3204_s26 = scalar_lea.vmem %s4201_s2, %s3198_s23  ;;  %s3213_s29 = scalar_lea.vmem %s4200_s1, %s3198_s23 }
   0xf   : > { %v1278_v1 = vld [vmem:[%s3204_s26 + $0x20] sm:$0xff]  ;;  %v1276_v2 = vld [vmem:[%s3204_s26 + $0x10] sm:$0xff]  ;;  %v580_v4 = vld [vmem:[%s3213_s29 + $0x78] sm:$0xff]  ;;  %s3357_s7 = scalar_lea.vmem %s4199_s0, %s3198_s23  ;;  %s3369_s10 = scalar_lea.vmem %s4203_s4, %s3198_s23 }
  0x10   : > { %v1274_v3 = vld [vmem:[%s3204_s26] sm:$0xff]  ;;  %1360 = vperm.xlu2 %2984, %v1278_v1   ;;  %1350 = vperm.xlu1 %2983, %v1276_v2   ;;  %v596_v5 = vld [vmem:[%s3213_s29 + $0xf8] sm:$0xff]  ;;  %v579_v8 = vld [vmem:[%s3213_s29 + $0x70] sm:$0xff]  ;;  %s3957_s16 = scalar_lea.vmem %s4204_s5, %s3198_s23 }
  0x11   : > { %v612_v6 = vld [vmem:[%s3213_s29 + $0x178] sm:$0xff]  ;;  %1340 = vperm.xlu0 %2982, %v1274_v3   ;;  %2821 = vmatpush.xpose.msk.msra.mxu0 %vm436_vm0, %v580_v4  ;;  %v595_v9 = vld [vmem:[%s3213_s29 + $0xf0] sm:$0xff]  ;;  %v1279_v12 = vld [vmem:[%s3204_s26 + $0x28] sm:$0xff] }
  0x12   : > { %v628_v7 = vld [vmem:[%s3213_s29 + $0x1f8] sm:$0xff]  ;;  %2853 = vmatpush.xpose.msk.msra.mxu1 %vm436_vm0, %v596_v5  ;;  %2885 = vmatpush.xpose.msk.msra.mxu2 %vm436_vm0, %v612_v6  ;;  %v611_v10 = vld [vmem:[%s3213_s29 + $0x170] sm:$0xff]  ;;  %v1275_v14 = vld [vmem:[%s3204_s26 + $0x8] sm:$0xff] }
  0x13   : > { %2917 = vmatpush.xpose.msk.msra.mxu3 %vm436_vm0, %v628_v7  ;;  %v627_v11 = vld [vmem:[%s3213_s29 + $0x1f0] sm:$0xff]  ;;  %v1277_v13 = vld [vmem:[%s3204_s26 + $0x18] sm:$0xff]  ;;  %v578_v15 = vld [vmem:[%s3213_s29 + $0x68] sm:$0xff] }
  0x14   : > { %v594_v16 = vld [vmem:[%s3213_s29 + $0xe8] sm:$0xff]  ;;  %v577_v19 = vld [vmem:[%s3213_s29 + $0x60] sm:$0xff]  ;;  %v1281_v24 = vld [vmem:[%s3204_s26 + $0x38] sm:$0xff] }
  0x15   : > { %2822 = vmatpush.xpose.msk.msra.mxu0 %vm436_vm0, %v579_v8  ;;  %v610_v17 = vld [vmem:[%s3213_s29 + $0x168] sm:$0xff]  ;;  %v593_v20 = vld [vmem:[%s3213_s29 + $0xe0] sm:$0xff]  ;;  %v1280_v25 = vld [vmem:[%s3204_s26 + $0x30] sm:$0xff] }
  0x16   : > { %2854 = vmatpush.xpose.msk.msra.mxu1 %vm436_vm0, %v595_v9  ;;  %2886 = vmatpush.xpose.msk.msra.mxu2 %vm436_vm0, %v611_v10  ;;  %v626_v18 = vld [vmem:[%s3213_s29 + $0x1e8] sm:$0xff]  ;;  %v609_v21 = vld [vmem:[%s3213_s29 + $0x160] sm:$0xff]  ;;  %v576_v26 = vld [vmem:[%s3213_s29 + $0x58] sm:$0xff] }
  0x17   : > { %2918 = vmatpush.xpose.msk.msra.mxu3 %vm436_vm0, %v627_v11  ;;  %v625_v22 = vld [vmem:[%s3213_s29 + $0x1e0] sm:$0xff]  ;;  %v592_v27 = vld [vmem:[%s3213_s29 + $0xd8] sm:$0xff]  ;;  %v575_v30 = vld [vmem:[%s3213_s29 + $0x50] sm:$0xff] }
  0x18   : > { %1365 = vperm.xlu2 %2984, %v1279_v12   ;;  %1355 = vperm.xlu1 %2983, %v1277_v13   ;;  %v1282_v23 = vld [vmem:[%s3204_s26 + $0x40] sm:$0xff]  ;;  %v608_v28 = vld [vmem:[%s3213_s29 + $0x158] sm:$0xff]  ;;  %v591_v31 = vld [vmem:[%s3213_s29 + $0xd0] sm:$0xff] }
  0x19   : > { %1345 = vperm.xlu0 %2982, %v1275_v14   ;;  %2823 = vmatpush.xpose.msk.msra.mxu0 %vm436_vm0, %v578_v15  ;;  %v624_v29 = vld [vmem:[%s3213_s29 + $0x1d8] sm:$0xff]  ;;  %v607_v32 = vld [vmem:[%s3213_s29 + $0x150] sm:$0xff]  ;;  %v1283_v36 = vld [vmem:[%s3204_s26 + $0x48] sm:$0xff] }
  0x1a   : > { %2855 = vmatpush.xpose.msk.msra.mxu1 %vm436_vm0, %v594_v16  ;;  %2887 = vmatpush.xpose.msk.msra.mxu2 %vm436_vm0, %v610_v17  ;;  %v623_v33 = vld [vmem:[%s3213_s29 + $0x1d0] sm:$0xff]  ;;  %v1285_v34 = vld [vmem:[%s3204_s26 + $0x58] sm:$0xff]  ;;  %v574_v37 = vld [vmem:[%s3213_s29 + $0x48] sm:$0xff] }
  0x1b   : > { %2919 = vmatpush.xpose.msk.msra.mxu3 %vm436_vm0, %v626_v18  ;;  %v1284_v35 = vld [vmem:[%s3204_s26 + $0x50] sm:$0xff]  ;;  %v590_v38 = vld [vmem:[%s3213_s29 + $0xc8] sm:$0xff]  ;;  %v573_v41 = vld [vmem:[%s3213_s29 + $0x40] sm:$0xff] }
  0x1c   : > { %v606_v39 = vld [vmem:[%s3213_s29 + $0x148] sm:$0xff]  ;;  %v589_v42 = vld [vmem:[%s3213_s29 + $0xc0] sm:$0xff]  ;;  %v572_v48 = vld [vmem:[%s3213_s29 + $0x38] sm:$0xff] }
  0x1d   : > { %2824 = vmatpush.xpose.msk.msra.mxu0 %vm436_vm0, %v577_v19  ;;  %v622_v40 = vld [vmem:[%s3213_s29 + $0x1c8] sm:$0xff]  ;;  %v605_v43 = vld [vmem:[%s3213_s29 + $0x140] sm:$0xff]  ;;  %v588_v49 = vld [vmem:[%s3213_s29 + $0xb8] sm:$0xff] }
  0x1e   : > { %2856 = vmatpush.xpose.msk.msra.mxu1 %vm436_vm0, %v593_v20  ;;  %2888 = vmatpush.xpose.msk.msra.mxu2 %vm436_vm0, %v609_v21  ;;  %v621_v44 = vld [vmem:[%s3213_s29 + $0x1c0] sm:$0xff]  ;;  %v604_v50 = vld [vmem:[%s3213_s29 + $0x138] sm:$0xff]  ;;  %v571_v52 = vld [vmem:[%s3213_s29 + $0x30] sm:$0xff] }
  0x1f   : > { %2920 = vmatpush.xpose.msk.msra.mxu3 %vm436_vm0, %v625_v22  ;;  %v1290_v45 = vld [vmem:[%s3204_s26 + $0x80] sm:$0xff]  ;;  %v620_v51 = vld [vmem:[%s3213_s29 + $0x1b8] sm:$0xff]  ;;  %v587_v53 = vld [vmem:[%s3213_s29 + $0xb0] sm:$0xff] }
  0x20   : > { %1380 = vperm.xlu2 %2984, %v1282_v23   ;;  %1375 = vperm.xlu1 %2983, %v1281_v24   ;;  %v1322_v46 = vld [vmem:[%s3204_s26 + $0x180] sm:$0xff]  ;;  %v603_v54 = vld [vmem:[%s3213_s29 + $0x130] sm:$0xff]  ;;  %v1291_v56 = vld [vmem:[%s3204_s26 + $0x88] sm:$0xff] }
  0x21   : > { %1370 = vperm.xlu0 %2982, %v1280_v25   ;;  %2825 = vmatpush.xpose.msk.msra.mxu0 %vm436_vm0, %v576_v26  ;;  %v1306_v47 = vld [vmem:[%s3204_s26 + $0x100] sm:$0xff]  ;;  %v619_v55 = vld [vmem:[%s3213_s29 + $0x1b0] sm:$0xff]  ;;  %v1323_v57 = vld [vmem:[%s3204_s26 + $0x188] sm:$0xff] }
  0x22   : > { %2857 = vmatpush.xpose.msk.msra.mxu1 %vm436_vm0, %v592_v27  ;;  %2889 = vmatpush.xpose.msk.msra.mxu2 %vm436_vm0, %v608_v28  ;;  %v1307_v58 = vld [vmem:[%s3204_s26 + $0x108] sm:$0xff]  ;;  %v569_v63 = vld [vmem:[%s3213_s29 + $0x20] sm:$0xff]  ;;  %v1292_v3 = vld [vmem:[%s3204_s26 + $0x90] sm:$0xff] }
  0x23   : > { %2921 = vmatpush.xpose.msk.msra.mxu3 %vm436_vm0, %v624_v29  ;;  %v570_v59 = vld [vmem:[%s3213_s29 + $0x28] sm:$0xff]  ;;  %v585_v0 = vld [vmem:[%s3213_s29 + $0xa0] sm:$0xff]  ;;  %v1324_v4 = vld [vmem:[%s3204_s26 + $0x190] sm:$0xff] }
  0x24   : > { %v586_v60 = vld [vmem:[%s3213_s29 + $0xa8] sm:$0xff]  ;;  %v601_v1 = vld [vmem:[%s3213_s29 + $0x120] sm:$0xff]  ;;  %v1308_v5 = vld [vmem:[%s3204_s26 + $0x110] sm:$0xff] }
  0x25   : > { %2826 = vmatpush.xpose.msk.msra.mxu0 %vm436_vm0, %v575_v30  ;;  %v602_v61 = vld [vmem:[%s3213_s29 + $0x128] sm:$0xff]  ;;  %v617_v2 = vld [vmem:[%s3213_s29 + $0x1a0] sm:$0xff]  ;;  %v568_v6 = vld [vmem:[%s3213_s29 + $0x18] sm:$0xff] }
  0x26   : > { %2858 = vmatpush.xpose.msk.msra.mxu1 %vm436_vm0, %v591_v31  ;;  %2890 = vmatpush.xpose.msk.msra.mxu2 %vm436_vm0, %v607_v32  ;;  %v618_v62 = vld [vmem:[%s3213_s29 + $0x1a8] sm:$0xff]  ;;  %v584_v7 = vld [vmem:[%s3213_s29 + $0x98] sm:$0xff]  ;;  %v567_v10 = vld [vmem:[%s3213_s29 + $0x10] sm:$0xff] }
  0x27   : > { %2922 = vmatpush.xpose.msk.msra.mxu3 %vm436_vm0, %v623_v33  ;;  %v600_v8 = vld [vmem:[%s3213_s29 + $0x118] sm:$0xff]  ;;  %v583_v11 = vld [vmem:[%s3213_s29 + $0x90] sm:$0xff]  ;;  %v566_v17 = vld [vmem:[%s3213_s29 + $0x8] sm:$0xff] }
  0x28   : > { %1395 = vperm.xlu2 %2984, %v1285_v34   ;;  %1390 = vperm.xlu1 %2983, %v1284_v35   ;;  %v616_v9 = vld [vmem:[%s3213_s29 + $0x198] sm:$0xff]  ;;  %v599_v12 = vld [vmem:[%s3213_s29 + $0x110] sm:$0xff]  ;;  %v582_v18 = vld [vmem:[%s3213_s29 + $0x88] sm:$0xff] }
  0x29   : > { %1385 = vperm.xlu0 %2982, %v1283_v36   ;;  %2827 = vmatpush.xpose.msk.msra.mxu0 %vm436_vm0, %v574_v37  ;;  %v615_v13 = vld [vmem:[%s3213_s29 + $0x190] sm:$0xff]  ;;  %v1293_v14 = vld [vmem:[%s3204_s26 + $0x98] sm:$0xff]  ;;  %v598_v19 = vld [vmem:[%s3213_s29 + $0x108] sm:$0xff] }
  0x2a   : > { %2859 = vmatpush.xpose.msk.msra.mxu1 %vm436_vm0, %v590_v38  ;;  %2891 = vmatpush.xpose.msk.msra.mxu2 %vm436_vm0, %v606_v39  ;;  %v1325_v15 = vld [vmem:[%s3204_s26 + $0x198] sm:$0xff]  ;;  %v614_v20 = vld [vmem:[%s3213_s29 + $0x188] sm:$0xff]  ;;  %v565_v21 = vld [vmem:[%s3213_s29] sm:$0xff] }
  0x2b   : > { %2923 = vmatpush.xpose.msk.msra.mxu3 %vm436_vm0, %v622_v40  ;;  %v1309_v16 = vld [vmem:[%s3204_s26 + $0x118] sm:$0xff]  ;;  %v581_v22 = vld [vmem:[%s3213_s29 + $0x80] sm:$0xff]  ;;  %v2104_v36 = vld [vmem:[%s3369_s10 + $0x170] sm:$0xff] }
  0x2c   : > { %v597_v23 = vld [vmem:[%s3213_s29 + $0x100] sm:$0xff]  ;;  %v2105_v26 = vld [vmem:[%s3369_s10 + $0x178] sm:$0xff]  ;;  %v2120_v37 = vld [vmem:[%s3369_s10 + $0x1f0] sm:$0xff] }
  0x2d   : > { %2828 = vmatpush.xpose.msk.msra.mxu0 %vm436_vm0, %v573_v41  ;;  %v613_v24 = vld [vmem:[%s3213_s29 + $0x180] sm:$0xff]  ;;  %v2121_v33 = vld [vmem:[%s3369_s10 + $0x1f8] sm:$0xff]  ;;  %v2072_v38 = vld [vmem:[%s3369_s10 + $0x70] sm:$0xff] }
  0x2e   : > { %2860 = vmatpush.xpose.msk.msra.mxu1 %vm436_vm0, %v589_v42  ;;  %2892 = vmatpush.xpose.msk.msra.mxu2 %vm436_vm0, %v605_v43  ;;  %v501_v25 = vld [vmem:[%s3357_s7] sm:$0xff]  ;;  %v2073_v34 = vld [vmem:[%s3369_s10 + $0x78] sm:$0xff]  ;;  %v2088_v39 = vld [vmem:[%s3369_s10 + $0xf0] sm:$0xff] }
  0x2f   : > { %2924 = vmatpush.xpose.msk.msra.mxu3 %vm436_vm0, %v621_v44  ;;  %v517_v27 = vld [vmem:[%s3357_s7 + $0x80] sm:$0xff]  ;;  %v2089_v35 = vld [vmem:[%s3369_s10 + $0xf8] sm:$0xff]  ;;  %v2103_v40 = vld [vmem:[%s3369_s10 + $0x168] sm:$0xff] }
  0x30   : > { %1420 = vperm.xlu2 %2984, %v1290_v45   ;;  %1580 = vperm.xlu1 %2983, %v1322_v46   ;;  %v533_v28 = vld [vmem:[%s3357_s7 + $0x100] sm:$0xff]  ;;  %v2119_v41 = vld [vmem:[%s3369_s10 + $0x1e8] sm:$0xff] }
  0x31   : > { %1500 = vperm.xlu0 %2982, %v1306_v47   ;;  %2829 = vmatpush.xpose.msk.msra.mxu0 %vm436_vm0, %v572_v48  ;;  %v1294_v29 = vld [vmem:[%s3204_s26 + $0xa0] sm:$0xff]  ;;  %v502_v42 = vld [vmem:[%s3357_s7 + $0x8] sm:$0xff] }
  0x32   : > { %2861 = vmatpush.xpose.msk.msra.mxu1 %vm436_vm0, %v588_v49  ;;  %2893 = vmatpush.xpose.msk.msra.mxu2 %vm436_vm0, %v604_v50  ;;  %v549_v30 = vld [vmem:[%s3357_s7 + $0x180] sm:$0xff]  ;;  %v1295_v43 = vld [vmem:[%s3204_s26 + $0xa8] sm:$0xff] }
  0x33   : > { %2925 = vmatpush.xpose.msk.msra.mxu3 %vm436_vm0, %v620_v51  ;;  %v1326_v31 = vld [vmem:[%s3204_s26 + $0x1a0] sm:$0xff]  ;;  %v518_v44 = vld [vmem:[%s3357_s7 + $0x88] sm:$0xff] }
  0x34   : > { %v1310_v32 = vld [vmem:[%s3204_s26 + $0x120] sm:$0xff]  ;;  %v534_v45 = vld [vmem:[%s3357_s7 + $0x108] sm:$0xff] }
  0x35   : > { %2830 = vmatpush.xpose.msk.msra.mxu0 %vm436_vm0, %v571_v52  ;;  %v550_v46 = vld [vmem:[%s3357_s7 + $0x188] sm:$0xff]  ;;  %v2102_v51 = vld [vmem:[%s3369_s10 + $0x160] sm:$0xff] }
  0x36   : > { %2862 = vmatpush.xpose.msk.msra.mxu1 %vm436_vm0, %v587_v53  ;;  %2894 = vmatpush.xpose.msk.msra.mxu2 %vm436_vm0, %v603_v54  ;;  %v1327_v47 = vld [vmem:[%s3204_s26 + $0x1a8] sm:$0xff]  ;;  %v2118_v52 = vld [vmem:[%s3369_s10 + $0x1e0] sm:$0xff]  ;;  %v503_v54 = vld [vmem:[%s3357_s7 + $0x10] sm:$0xff] }
  0x37   : > { %2926 = vmatpush.xpose.msk.msra.mxu3 %vm436_vm0, %v619_v55  ;;  %v1311_v48 = vld [vmem:[%s3204_s26 + $0x128] sm:$0xff]  ;;  %v2070_v53 = vld [vmem:[%s3369_s10 + $0x60] sm:$0xff]  ;;  %v1296_v55 = vld [vmem:[%s3204_s26 + $0xb0] sm:$0xff] }
  0x38   : > { %1425 = vperm.xlu2 %2984, %v1291_v56   ;;  %1585 = vperm.xlu1 %2983, %v1323_v57   ;;  %v2071_v49 = vld [vmem:[%s3369_s10 + $0x68] sm:$0xff]  ;;  %v519_v56 = vld [vmem:[%s3357_s7 + $0x90] sm:$0xff] }
  0x39   : > { %1505 = vperm.xlu0 %2982, %v1307_v58   ;;  %2831 = vmatpush.xpose.msk.msra.mxu0 %vm436_vm0, %v570_v59  ;;  %v2087_v50 = vld [vmem:[%s3369_s10 + $0xe8] sm:$0xff]  ;;  %v535_v57 = vld [vmem:[%s3357_s7 + $0x110] sm:$0xff] }
  0x3a   : > { %2863 = vmatpush.xpose.msk.msra.mxu1 %vm436_vm0, %v586_v60  ;;  %2895 = vmatpush.xpose.msk.msra.mxu2 %vm436_vm0, %v602_v61  ;;  %v551_v58 = vld [vmem:[%s3357_s7 + $0x190] sm:$0xff]  ;;  %v2086_v61 = vld [vmem:[%s3369_s10 + $0xe0] sm:$0xff] }
  0x3b   : > { %2927 = vmatpush.xpose.msk.msra.mxu3 %vm436_vm0, %v618_v62  ;;  %v1328_v59 = vld [vmem:[%s3204_s26 + $0x1b0] sm:$0xff]  ;;  %v2101_v62 = vld [vmem:[%s3369_s10 + $0x158] sm:$0xff] }
  0x3c   : > { %v1312_v60 = vld [vmem:[%s3204_s26 + $0x130] sm:$0xff] }
  0x3d   : > { %2832 = vmatpush.xpose.msk.msra.mxu0 %vm436_vm0, %v569_v63  ;;  %v2117_v63 = vld [vmem:[%s3369_s10 + $0x1d8] sm:$0xff] }
  0x3e   : > { %2864 = vmatpush.xpose.msk.msra.mxu1 %vm436_vm0, %v585_v0  ;;  %2896 = vmatpush.xpose.msk.msra.mxu2 %vm436_vm0, %v601_v1  ;;  %v2069_v0 = vld [vmem:[%s3369_s10 + $0x58] sm:$0xff] }
  0x3f   : > { %2928 = vmatpush.xpose.msk.msra.mxu3 %vm436_vm0, %v617_v2  ;;  %v504_v1 = vld [vmem:[%s3357_s7 + $0x18] sm:$0xff] }
  0x40   : > { %1430 = vperm.xlu2 %2984, %v1292_v3   ;;  %1590 = vperm.xlu1 %2983, %v1324_v4   ;;  %v1297_v2 = vld [vmem:[%s3204_s26 + $0xb8] sm:$0xff] }
  0x41   : > { %1510 = vperm.xlu0 %2982, %v1308_v5   ;;  %2833 = vmatpush.xpose.msk.msra.mxu0 %vm436_vm0, %v568_v6  ;;  %v520_v3 = vld [vmem:[%s3357_s7 + $0x98] sm:$0xff] }
  0x42   : > { %2865 = vmatpush.xpose.msk.msra.mxu1 %vm436_vm0, %v584_v7  ;;  %2897 = vmatpush.xpose.msk.msra.mxu2 %vm436_vm0, %v600_v8  ;;  %v536_v4 = vld [vmem:[%s3357_s7 + $0x118] sm:$0xff] }
  0x43   : > { %2929 = vmatpush.xpose.msk.msra.mxu3 %vm436_vm0, %v616_v9  ;;  %v552_v5 = vld [vmem:[%s3357_s7 + $0x198] sm:$0xff]  ;;  %v2100_v9 = vld [vmem:[%s3369_s10 + $0x150] sm:$0xff] }
  0x44   : > { %v1329_v6 = vld [vmem:[%s3204_s26 + $0x1b8] sm:$0xff] }
  0x45   : > { %2834 = vmatpush.xpose.msk.msra.mxu0 %vm436_vm0, %v567_v10  ;;  %v1313_v7 = vld [vmem:[%s3204_s26 + $0x138] sm:$0xff]  ;;  %v2116_v10 = vld [vmem:[%s3369_s10 + $0x1d0] sm:$0xff] }
  0x46   : > { %2866 = vmatpush.xpose.msk.msra.mxu1 %vm436_vm0, %v583_v11  ;;  %2898 = vmatpush.xpose.msk.msra.mxu2 %vm436_vm0, %v599_v12  ;;  %v2085_v8 = vld [vmem:[%s3369_s10 + $0xd8] sm:$0xff]  ;;  %v2068_v11 = vld [vmem:[%s3369_s10 + $0x50] sm:$0xff]  ;;  %v505_v12 = vld [vmem:[%s3357_s7 + $0x20] sm:$0xff] }
  0x47   : > { %2930 = vmatpush.xpose.msk.msra.mxu3 %vm436_vm0, %v615_v13  ;;  %v1298_v13 = vld [vmem:[%s3204_s26 + $0xc0] sm:$0xff] }
  0x48   : > { %1435 = vperm.xlu2 %2984, %v1293_v14   ;;  %1595 = vperm.xlu1 %2983, %v1325_v15   ;;  %v521_v14 = vld [vmem:[%s3357_s7 + $0xa0] sm:$0xff] }
  0x49   : > { %1515 = vperm.xlu0 %2982, %v1309_v16   ;;  %2835 = vmatpush.xpose.msk.msra.mxu0 %vm436_vm0, %v566_v17  ;;  %v537_v15 = vld [vmem:[%s3357_s7 + $0x120] sm:$0xff] }
  0x4a   : > { %2867 = vmatpush.xpose.msk.msra.mxu1 %vm436_vm0, %v582_v18  ;;  %2899 = vmatpush.xpose.msk.msra.mxu2 %vm436_vm0, %v598_v19  ;;  %v553_v16 = vld [vmem:[%s3357_s7 + $0x1a0] sm:$0xff]  ;;  %v2084_v19 = vld [vmem:[%s3369_s10 + $0xd0] sm:$0xff] }
  0x4b   : > { %2931 = vmatpush.xpose.msk.msra.mxu3 %vm436_vm0, %v614_v20  ;;  %v1330_v17 = vld [vmem:[%s3204_s26 + $0x1c0] sm:$0xff]  ;;  %v2099_v20 = vld [vmem:[%s3369_s10 + $0x148] sm:$0xff] }
  0x4c   : > { %v1314_v18 = vld [vmem:[%s3204_s26 + $0x140] sm:$0xff] }
  0x4d   : > { %2836 = vmatpush.xpose.msk.msra.mxu0 %vm436_vm0, %v565_v21  ;;  %v2115_v21 = vld [vmem:[%s3369_s10 + $0x1c8] sm:$0xff] }
  0x4e   : > { %2868 = vmatpush.xpose.msk.msra.mxu1 %vm436_vm0, %v581_v22  ;;  %2900 = vmatpush.xpose.msk.msra.mxu2 %vm436_vm0, %v597_v23  ;;  %v2067_v22 = vld [vmem:[%s3369_s10 + $0x48] sm:$0xff] }
  0x4f   : > { %2932 = vmatpush.xpose.msk.msra.mxu3 %vm436_vm0, %v613_v24  ;;  %v506_v23 = vld [vmem:[%s3357_s7 + $0x28] sm:$0xff] }
  0x50   : > { %2837 = vmatmul.msk.f32.vlgmr.msra.gmra.mxu0 %vm436_vm0, %v501_v25  ;;  %1440 = vperm.xlu2 %2984, %v1294_v29   ;;  %v1299_v24 = vld [vmem:[%s3204_s26 + $0xc8] sm:$0xff] }
  0x51   : > { %2869 = vmatmul.msk.f32.vlgmr.msra.gmra.mxu1 %vm436_vm0, %v517_v27  ;;  %2901 = vmatmul.msk.f32.vlgmr.msra.gmra.mxu2 %vm436_vm0, %v533_v28  ;;  %v522_v25 = vld [vmem:[%s3357_s7 + $0xa8] sm:$0xff] }
  0x52   : > { %2252 = vmatpush.msrb.mxu2 %v2105_v26  ;;  %2933 = vmatmul.msk.f32.vlgmr.msra.gmra.mxu3 %vm436_vm0, %v549_v30  ;;  %v538_v26 = vld [vmem:[%s3357_s7 + $0x128] sm:$0xff] }
  0x53   : > { %1600 = vperm.xlu1 %2983, %v1326_v31   ;;  %1520 = vperm.xlu0 %2982, %v1310_v32   ;;  %v554_v27 = vld [vmem:[%s3357_s7 + $0x1a8] sm:$0xff]  ;;  %v2098_v32 = vld [vmem:[%s3369_s10 + $0x140] sm:$0xff] }
  0x54   : > { %2317 = vmatpush.msrb.mxu3 %v2121_v33  ;;  %2122 = vmatpush.msrb.mxu0 %v2073_v34  ;;  %v1331_v28 = vld [vmem:[%s3204_s26 + $0x1c8] sm:$0xff]  ;;  %v2114_v33 = vld [vmem:[%s3369_s10 + $0x1c0] sm:$0xff] }
  0x55   : > { %2187 = vmatpush.msrb.mxu1 %v2089_v35  ;;  %2253 = vmatpush.msrb.mxu2 %v2104_v36  ;;  %v1315_v29 = vld [vmem:[%s3204_s26 + $0x148] sm:$0xff]  ;;  %v2066_v34 = vld [vmem:[%s3369_s10 + $0x40] sm:$0xff]  ;;  %v507_v35 = vld [vmem:[%s3357_s7 + $0x30] sm:$0xff] }
  0x56   : > { %2318 = vmatpush.msrb.mxu3 %v2120_v37  ;;  %2123 = vmatpush.msrb.mxu0 %v2072_v38  ;;  %v2083_v30 = vld [vmem:[%s3369_s10 + $0xc8] sm:$0xff]  ;;  %v1300_v36 = vld [vmem:[%s3204_s26 + $0xd0] sm:$0xff] }
  0x57   : > { %2188 = vmatpush.msrb.mxu1 %v2088_v39  ;;  %2254 = vmatpush.msrb.mxu2 %v2103_v40  ;;  %v523_v37 = vld [vmem:[%s3357_s7 + $0xb0] sm:$0xff] }
  0x58   : > { %2319 = vmatpush.msrb.mxu3 %v2119_v41  ;;  %2838 = vmatmul.msk.f32.gmra.mxu0 %vm436_vm0, %v502_v42  ;;  %v539_v38 = vld [vmem:[%s3357_s7 + $0x130] sm:$0xff] }
  0x59   : > { %1445 = vperm.xlu2 %2984, %v1295_v43   ;;  %2870 = vmatmul.msk.f32.gmra.mxu1 %vm436_vm0, %v518_v44  ;;  %v555_v39 = vld [vmem:[%s3357_s7 + $0x1b0] sm:$0xff]  ;;  %v2082_v43 = vld [vmem:[%s3369_s10 + $0xc0] sm:$0xff] }
  0x5a   : > { %2902 = vmatmul.msk.f32.gmra.mxu2 %vm436_vm0, %v534_v45  ;;  %2934 = vmatmul.msk.f32.gmra.mxu3 %vm436_vm0, %v550_v46  ;;  %v1332_v40 = vld [vmem:[%s3204_s26 + $0x1d0] sm:$0xff]  ;;  %v2097_v45 = vld [vmem:[%s3369_s10 + $0x138] sm:$0xff] }
  0x5b   : > { %1605 = vperm.xlu1 %2983, %v1327_v47   ;;  %1525 = vperm.xlu0 %2982, %v1311_v48   ;;  %v1316_v41 = vld [vmem:[%s3204_s26 + $0x150] sm:$0xff]  ;;  %v2113_v46 = vld [vmem:[%s3369_s10 + $0x1b8] sm:$0xff] }
  0x5c   : > { %2124 = vmatpush.msrb.mxu0 %v2071_v49  ;;  %2189 = vmatpush.msrb.mxu1 %v2087_v50  ;;  %v2065_v47 = vld [vmem:[%s3369_s10 + $0x38] sm:$0xff] }
  0x5d   : > { %2255 = vmatpush.msrb.mxu2 %v2102_v51  ;;  %2320 = vmatpush.msrb.mxu3 %v2118_v52  ;;  %v508_v49 = vld [vmem:[%s3357_s7 + $0x38] sm:$0xff] }
  0x5e   : > { %2125 = vmatpush.msrb.mxu0 %v2070_v53  ;;  %2190 = vmatpush.msrb.mxu1 %v2086_v61  ;;  %v1301_v50 = vld [vmem:[%s3204_s26 + $0xd8] sm:$0xff]  ;;  %v2064_v61 = vld [vmem:[%s3369_s10 + $0x30] sm:$0xff] }
  0x5f   : > { %2256 = vmatpush.msrb.mxu2 %v2101_v62  ;;  %2321 = vmatpush.msrb.mxu3 %v2117_v63  ;;  %v524_v51 = vld [vmem:[%s3357_s7 + $0xb8] sm:$0xff]  ;;  %v509_v62 = vld [vmem:[%s3357_s7 + $0x40] sm:$0xff] }
  0x60   : > { %2839 = vmatmul.msk.f32.gmra.mxu0 %vm436_vm0, %v503_v54  ;;  %2191 = vmatpush.msrb.mxu1 %v2085_v8  ;;  %v540_v52 = vld [vmem:[%s3357_s7 + $0x138] sm:$0xff]  ;;  %v1286_v63 = vld [vmem:[%s3204_s26 + $0x60] sm:$0xff] }
  0x61   : > { %1450 = vperm.xlu2 %2984, %v1296_v55   ;;  %2871 = vmatmul.msk.f32.gmra.mxu1 %vm436_vm0, %v519_v56  ;;  %v556_v53 = vld [vmem:[%s3357_s7 + $0x1b8] sm:$0xff] }
  0x62   : > { %2903 = vmatmul.msk.f32.gmra.mxu2 %vm436_vm0, %v535_v57  ;;  %2935 = vmatmul.msk.f32.gmra.mxu3 %vm436_vm0, %v551_v58  ;;  %v1333_v54 = vld [vmem:[%s3204_s26 + $0x1d8] sm:$0xff] }
  0x63   : > { %1610 = vperm.xlu1 %2983, %v1328_v59   ;;  %1530 = vperm.xlu0 %2982, %v1312_v60   ;;  %v1317_v55 = vld [vmem:[%s3204_s26 + $0x158] sm:$0xff]  ;;  %v2096_v59 = vld [vmem:[%s3369_s10 + $0x130] sm:$0xff] }
  0x64   : > { %2126 = vmatpush.msrb.mxu0 %v2069_v0  ;;  %2257 = vmatpush.msrb.mxu2 %v2100_v9  ;;  %v2081_v57 = vld [vmem:[%s3369_s10 + $0xb8] sm:$0xff]  ;;  %v2112_v60 = vld [vmem:[%s3369_s10 + $0x1b0] sm:$0xff]  ;;  %v525_v0 = vld [vmem:[%s3357_s7 + $0xc0] sm:$0xff] }
  0x65   : > { %2322 = vmatpush.msrb.mxu3 %v2116_v10  ;;  %2192 = vmatpush.msrb.mxu1 %v2084_v19  ;;  %v2095_v9 = vld [vmem:[%s3369_s10 + $0x128] sm:$0xff] }
  0x66   : > { %2127 = vmatpush.msrb.mxu0 %v2068_v11  ;;  %2258 = vmatpush.msrb.mxu2 %v2099_v20  ;;  %v2111_v10 = vld [vmem:[%s3369_s10 + $0x1a8] sm:$0xff] }
  0x67   : > { %2323 = vmatpush.msrb.mxu3 %v2115_v21  ;;  %2193 = vmatpush.msrb.mxu1 %v2083_v30  ;;  %v2063_v11 = vld [vmem:[%s3369_s10 + $0x28] sm:$0xff]  ;;  %v559_v30 = vld [vmem:[%s3357_s7 + $0x1d0] sm:$0xff] }
  0x68   : > { %2840 = vmatmul.msk.f32.gmra.mxu0 %vm436_vm0, %v504_v1  ;;  %2259 = vmatpush.msrb.mxu2 %v2098_v32  ;;  %v541_v1 = vld [vmem:[%s3357_s7 + $0x140] sm:$0xff]  ;;  %v2079_v20 = vld [vmem:[%s3369_s10 + $0xa8] sm:$0xff] }
  0x69   : > { %1455 = vperm.xlu2 %2984, %v1297_v2   ;;  %2872 = vmatmul.msk.f32.gmra.mxu1 %vm436_vm0, %v520_v3  ;;  %v557_v3 = vld [vmem:[%s3357_s7 + $0x1c0] sm:$0xff]  ;;  %v1303_v32 = vld [vmem:[%s3204_s26 + $0xe8] sm:$0xff] }
  0x6a   : > { %2904 = vmatmul.msk.f32.gmra.mxu2 %vm436_vm0, %v536_v4  ;;  %2936 = vmatmul.msk.f32.gmra.mxu3 %vm436_vm0, %v552_v5  ;;  %v3476_v31 = vpop.permute.xlu2 %1360  ;;  %v1334_v4 = vld [vmem:[%s3204_s26 + $0x1e0] sm:$0xff] }
  0x6b   : > { %1615 = vperm.xlu1 %2983, %v1329_v6   ;;  %1535 = vperm.xlu0 %2982, %v1313_v7   ;;  %v1318_v5 = vld [vmem:[%s3204_s26 + $0x160] sm:$0xff]  ;;  %v2080_v6 = vld [vmem:[%s3369_s10 + $0xb0] sm:$0xff] }
  0x6c   : > { %2128 = vmatpush.msrb.mxu0 %v2067_v22  ;;  %2324 = vmatpush.msrb.mxu3 %v2114_v33  ;;  %v2094_v22 = vld [vmem:[%s3369_s10 + $0x120] sm:$0xff]  ;;  %v1287_v33 = vld [vmem:[%s3204_s26 + $0x68] sm:$0xff] }
  0x6d   : > { %2194 = vmatpush.msrb.mxu1 %v2082_v43  ;;  %2260 = vmatpush.msrb.mxu2 %v2097_v45  ;;  %v528_v43 = vld [vmem:[%s3357_s7 + $0xd8] sm:$0xff] }
  0x6e   : > { %2129 = vmatpush.msrb.mxu0 %v2066_v34  ;;  %2325 = vmatpush.msrb.mxu3 %v2113_v46  ;;  %v2078_v34 = vld [vmem:[%s3369_s10 + $0xa0] sm:$0xff]  ;;  %v544_v45 = vld [vmem:[%s3357_s7 + $0x158] sm:$0xff] }
  0x6f   : > { %2195 = vmatpush.msrb.mxu1 %v2081_v57  ;;  %2261 = vmatpush.msrb.mxu2 %v2096_v59  ;;  %v2092_v57 = vld [vmem:[%s3369_s10 + $0x110] sm:$0xff] }
  0x70   : > { %2841 = vmatmul.msk.f32.gmra.mxu0 %vm436_vm0, %v505_v12  ;;  %2326 = vmatpush.msrb.mxu3 %v2112_v60  ;;  %v510_v12 = vld [vmem:[%s3357_s7 + $0x48] sm:$0xff]  ;;  %v2108_v59 = vld [vmem:[%s3369_s10 + $0x190] sm:$0xff]  ;;  %v529_v60 = vld [vmem:[%s3357_s7 + $0xe0] sm:$0xff] }
  0x71   : > { %1460 = vperm.xlu2 %2984, %v1298_v13   ;;  %2873 = vmatmul.msk.f32.gmra.mxu1 %vm436_vm0, %v521_v14  ;;  %v1335_v13 = vld [vmem:[%s3204_s26 + $0x1e8] sm:$0xff] }
  0x72   : > { %2905 = vmatmul.msk.f32.gmra.mxu2 %vm436_vm0, %v537_v15  ;;  %2937 = vmatmul.msk.f32.gmra.mxu3 %vm436_vm0, %v553_v16  ;;  %v3500_v48 = vpop.permute.xlu2 %1365  ;;  %v526_v14 = vld [vmem:[%s3357_s7 + $0xc8] sm:$0xff] }
  0x73   : > { %1620 = vperm.xlu1 %2983, %v1330_v17   ;;  %1540 = vperm.xlu0 %2982, %v1314_v18   ;;  %v542_v15 = vld [vmem:[%s3357_s7 + $0x148] sm:$0xff]  ;;  %v1302_v18 = vld [vmem:[%s3204_s26 + $0xe0] sm:$0xff] }
  0x74   : > { %2130 = vmatpush.msrb.mxu0 %v2065_v47  ;;  %2196 = vmatpush.msrb.mxu1 %v2080_v6  ;;  %v558_v16 = vld [vmem:[%s3357_s7 + $0x1c8] sm:$0xff]  ;;  %v560_v47 = vld [vmem:[%s3357_s7 + $0x1d8] sm:$0xff] }
  0x75   : > { %2262 = vmatpush.msrb.mxu2 %v2095_v9  ;;  %2327 = vmatpush.msrb.mxu3 %v2111_v10  ;;  %v1319_v17 = vld [vmem:[%s3204_s26 + $0x168] sm:$0xff] }
  0x76   : > { %2131 = vmatpush.msrb.mxu0 %v2064_v61  ;;  %2197 = vmatpush.msrb.mxu1 %v2079_v20  ;;  %v545_v61 = vld [vmem:[%s3357_s7 + $0x160] sm:$0xff]  ;;  %v546_v6 = vld [vmem:[%s3357_s7 + $0x168] sm:$0xff]  ;;  %v531_v20 = vld [vmem:[%s3357_s7 + $0xf0] sm:$0xff] }
  0x77   : > { %2263 = vmatpush.msrb.mxu2 %v2094_v22  ;;  %v562_v10 = vld [vmem:[%s3357_s7 + $0x1e8] sm:$0xff]  ;;  %v2058_v22 = vld [vmem:[%s3369_s10] sm:$0xff] }
  0x78   : > { %2842 = vmatmul.msk.f32.gmra.mxu0 %vm436_vm0, %v506_v23  ;;  %v2110_v23 = vld [vmem:[%s3369_s10 + $0x1a0] sm:$0xff]  ;;  %2198 = vmatpush.msrb.mxu1 %v2078_v34 }
  0x79   : > { %1465 = vperm.xlu2 %2984, %v1299_v24   ;;  %2874 = vmatmul.msk.f32.gmra.mxu1 %vm436_vm0, %v522_v25  ;;  %v2062_v24 = vld [vmem:[%s3369_s10 + $0x20] sm:$0xff] }
  0x7a   : > { %2906 = vmatmul.msk.f32.gmra.mxu2 %vm436_vm0, %v538_v26  ;;  %2938 = vmatmul.msk.f32.gmra.mxu3 %vm436_vm0, %v554_v27  ;;  %v3525_v2 = vpop.permute.xlu2 %1380  ;;  %v511_v26 = vld [vmem:[%s3357_s7 + $0x50] sm:$0xff] }
  0x7b   : > { %1625 = vperm.xlu1 %2983, %v1331_v28   ;;  %1545 = vperm.xlu0 %2982, %v1315_v29   ;;  %v1320_v27 = vld [vmem:[%s3204_s26 + $0x170] sm:$0xff] }
  0x7c   : > { %2132 = vmatpush.msrb.mxu0 %v2063_v11  ;;  %2328 = vmatpush.msrb.mxu3 %v2110_v23  ;;  %v527_v28 = vld [vmem:[%s3357_s7 + $0xd0] sm:$0xff]  ;;  %v2074_v23 = vld [vmem:[%s3369_s10 + $0x80] sm:$0xff] }
  0x7d   : > { %v543_v29 = vld [vmem:[%s3357_s7 + $0x150] sm:$0xff] }
  0x7e   : > { %2133 = vmatpush.msrb.mxu0 %v2062_v24  ;;  %v2060_v11 = vld [vmem:[%s3369_s10 + $0x10] sm:$0xff] }
  0x7f   : > { %v547_v24 = vld [vmem:[%s3357_s7 + $0x170] sm:$0xff] }
  0x80   : > { %2843 = vmatmul.msk.f32.gmra.mxu0 %vm436_vm0, %v507_v35 }
  0x81   : > { %1470 = vperm.xlu2 %2984, %v1300_v36   ;;  %2875 = vmatmul.msk.f32.gmra.mxu1 %vm436_vm0, %v523_v37  ;;  %v512_v37 = vld [vmem:[%s3357_s7 + $0x58] sm:$0xff] }
  0x82   : > { %2907 = vmatmul.msk.f32.gmra.mxu2 %vm436_vm0, %v539_v38  ;;  %2939 = vmatmul.msk.f32.gmra.mxu3 %vm436_vm0, %v555_v39  ;;  %v3492_v42 = vpop.permute.xlu1 %1350  ;;  %v3550_v19 = vpop.permute.xlu2 %1395  ;;  %v1304_v38 = vld [vmem:[%s3204_s26 + $0xf0] sm:$0xff]  ;;  %v2093_v39 = vld [vmem:[%s3369_s10 + $0x118] sm:$0xff] }
  0x83   : > { %1630 = vperm.xlu1 %2983, %v1332_v40   ;;  %1550 = vperm.xlu0 %2982, %v1316_v41   ;;  %v3495_v44 = vpop.permute.xlu0 %1340  ;;  %v2109_v40 = vld [vmem:[%s3369_s10 + $0x198] sm:$0xff] }
  0x84   : > { %v2061_v41 = vld [vmem:[%s3369_s10 + $0x18] sm:$0xff]  ;;  %2264 = vmatpush.msrb.mxu2 %v2093_v39  ;;  %2329 = vmatpush.msrb.mxu3 %v2109_v40 }
  0x85   : > { %2134 = vmatpush.msrb.mxu0 %v2061_v41  ;;  %v548_v39 = vld [vmem:[%s3357_s7 + $0x178] sm:$0xff] }
  0x86   : > { %2265 = vmatpush.msrb.mxu2 %v2092_v57  ;;  %2330 = vmatpush.msrb.mxu3 %v2108_v59  ;;  %v564_v40 = vld [vmem:[%s3357_s7 + $0x1f8] sm:$0xff] }
  0x87   : > { %2135 = vmatpush.msrb.mxu0 %v2060_v11 }
  0x88   : > { %2844 = vmatmul.msk.f32.gmra.mxu0 %vm436_vm0, %v508_v49  ;;  %v1288_v49 = vld [vmem:[%s3204_s26 + $0x70] sm:$0xff] }
  0x89   : > { %1475 = vperm.xlu2 %2984, %v1301_v50   ;;  %2876 = vmatmul.msk.f32.gmra.mxu1 %vm436_vm0, %v524_v51  ;;  %v1336_v50 = vld [vmem:[%s3204_s26 + $0x1f0] sm:$0xff]  ;;  %v2077_v51 = vld [vmem:[%s3369_s10 + $0x98] sm:$0xff] }
  0x8a   : > { %2908 = vmatmul.msk.f32.gmra.mxu2 %vm436_vm0, %v540_v52  ;;  %2940 = vmatmul.msk.f32.gmra.mxu3 %vm436_vm0, %v556_v53  ;;  %v3513_v56 = vpop.permute.xlu1 %1355  ;;  %v3575_v35 = vpop.permute.xlu2 %1420  ;;  %v513_v53 = vld [vmem:[%s3357_s7 + $0x60] sm:$0xff] }
  0x8b   : > { %1635 = vperm.xlu1 %2983, %v1333_v54   ;;  %1555 = vperm.xlu0 %2982, %v1317_v55   ;;  %v3516_v58 = vpop.permute.xlu0 %1345  ;;  %v1289_v55 = vld [vmem:[%s3204_s26 + $0x78] sm:$0xff] }
  0x8c   : > { %2199 = vmatpush.msrb.mxu1 %v2077_v51 }
  0x90   : > { %2845 = vmatmul.msk.f32.gmra.mxu0 %vm436_vm0, %v509_v62  ;;  %v561_v62 = vld [vmem:[%s3357_s7 + $0x1e0] sm:$0xff] }
  0x91   : > { %1400 = vperm.xlu2 %2984, %v1286_v63   ;;  %2877 = vmatmul.msk.f32.gmra.mxu1 %vm436_vm0, %v525_v0  ;;  %v1337_v63 = vld [vmem:[%s3204_s26 + $0x1f8] sm:$0xff] }
  0x92   : > { %2909 = vmatmul.msk.f32.gmra.mxu2 %vm436_vm0, %v541_v1  ;;  %2941 = vmatmul.msk.f32.gmra.mxu3 %vm436_vm0, %v557_v3  ;;  %v3535_v7 = vpop.permute.xlu1 %1375  ;;  %v3599_v54 = vpop.permute.xlu2 %1425  ;;  %v1321_v0 = vld [vmem:[%s3204_s26 + $0x178] sm:$0xff] }
  0x93   : > { %1640 = vperm.xlu1 %2983, %v1334_v4   ;;  %1560 = vperm.xlu0 %2982, %v1318_v5   ;;  %v3537_v8 = vpop.permute.xlu0 %1370  ;;  %v514_v4 = vld [vmem:[%s3357_s7 + $0x68] sm:$0xff] }
  0x94   : > { %v530_v5 = vld [vmem:[%s3357_s7 + $0xe8] sm:$0xff] }
  0x98   : > { %2846 = vmatmul.msk.f32.gmra.mxu0 %vm436_vm0, %v510_v12  ;;  %v2076_v12 = vld [vmem:[%s3369_s10 + $0x90] sm:$0xff] }
  0x99   : > { %1645 = vperm.xlu2 %2984, %v1335_v13   ;;  %2878 = vmatmul.msk.f32.gmra.mxu1 %vm436_vm0, %v526_v14  ;;  %v1305_v13 = vld [vmem:[%s3204_s26 + $0xf8] sm:$0xff] }
  0x9a   : > { %2910 = vmatmul.msk.f32.gmra.mxu2 %vm436_vm0, %v542_v15  ;;  %2942 = vmatmul.msk.f32.gmra.mxu3 %vm436_vm0, %v558_v16  ;;  %v3561_v25 = vpop.permute.xlu1 %1390  ;;  %v3620_v9 = vpop.permute.xlu2 %1430  ;;  %v2059_v16 = vld [vmem:[%s3369_s10 + $0x8] sm:$0xff] }
  0x9b   : > { %1565 = vperm.xlu1 %2983, %v1319_v17   ;;  %1480 = vperm.xlu0 %2982, %v1302_v18   ;;  %v3556_v21 = vpop.permute.xlu0 %1385  ;;  %v2075_v17 = vld [vmem:[%s3369_s10 + $0x88] sm:$0xff]  ;;  %v515_v18 = vld [vmem:[%s3357_s7 + $0x70] sm:$0xff] }
  0x9c   : > { %2200 = vmatpush.msrb.mxu1 %v2076_v12  ;;  %2136 = vmatpush.msrb.mxu0 %v2059_v16 }
  0x9e   : > { %2201 = vmatpush.msrb.mxu1 %v2075_v17  ;;  %2137 = vmatpush.msrb.mxu0 %v2058_v22 }
  0xa0   : > { %2847 = vmatmul.msk.f32.gmra.mxu0 %vm436_vm0, %v511_v26  ;;  %v2091_v26 = vld [vmem:[%s3369_s10 + $0x108] sm:$0xff]  ;;  %2202 = vmatpush.msrb.mxu1 %v2074_v23 }
  0xa1   : > { %1570 = vperm.xlu2 %2984, %v1320_v27   ;;  %2879 = vmatmul.msk.f32.gmra.mxu1 %vm436_vm0, %v527_v28  ;;  %v2107_v27 = vld [vmem:[%s3369_s10 + $0x188] sm:$0xff]  ;;  %v563_v28 = vld [vmem:[%s3357_s7 + $0x1f0] sm:$0xff] }
  0xa2   : > { %2911 = vmatmul.msk.f32.gmra.mxu2 %vm436_vm0, %v543_v29  ;;  %2943 = vmatmul.msk.f32.gmra.mxu3 %vm436_vm0, %v559_v30  ;;  %v3586_v46 = vpop.permute.xlu1 %1580  ;;  %v3645_v29 = vpop.permute.xlu2 %1435  ;;  %v2090_v30 = vld [vmem:[%s3369_s10 + $0x100] sm:$0xff] }
  0xa3   : > { %1485 = vperm.xlu1 %2983, %v1303_v32   ;;  %1405 = vperm.xlu0 %2982, %v1287_v33   ;;  %v3577_v36 = vpop.permute.xlu0 %1500  ;;  %v2106_v32 = vld [vmem:[%s3369_s10 + $0x180] sm:$0xff] }
  0xa4   : > { %2266 = vmatpush.msrb.mxu2 %v2091_v26  ;;  %2331 = vmatpush.msrb.mxu3 %v2107_v27 }
  0xa6   : > { %2267 = vmatpush.msrb.mxu2 %v2090_v30  ;;  %2332 = vmatpush.msrb.mxu3 %v2106_v32 }
  0xa8   : > { %2848 = vmatmul.msk.f32.gmra.mxu0 %vm436_vm0, %v512_v37  ;;  %v516_v37 = vld [vmem:[%s3357_s7 + $0x78] sm:$0xff] }
  0xa9   : > { %1490 = vperm.xlu2 %2984, %v1304_v38   ;;  %2880 = vmatmul.msk.f32.gmra.mxu1 %vm436_vm0, %v528_v43  ;;  %v532_v38 = vld [vmem:[%s3357_s7 + $0xf8] sm:$0xff]  ;;  %v3667_v43 = vld [vmem:[%s3382_s13] ss:$0 sm:$0xff] }
  0xaa   : > { %2912 = vmatmul.msk.f32.gmra.mxu2 %vm436_vm0, %v544_v45  ;;  %2944 = vmatmul.msk.f32.gmra.mxu3 %vm436_vm0, %v560_v47  ;;  %v3610_v1 = vpop.permute.xlu1 %1585  ;;  %v3664_v41 = vpop.permute.xlu2 %1440 }
  0xab   : > { %1410 = vperm.xlu1 %2983, %v1288_v49   ;;  %1650 = vperm.xlu0 %2982, %v1336_v50   ;;  %v3596_v52 = vpop.permute.xlu0 %1505  ;;  %v3672_v49 = vld [vmem:[%s3382_s13 + $0x1] ss:$0 sm:$0xff] }
  0xb0   : > { %2849 = vmatmul.msk.f32.gmra.mxu0 %vm436_vm0, %v513_v53 }
  0xb1   : > { %1415 = vperm.xlu2 %2984, %v1289_v55   ;;  %2881 = vmatmul.msk.f32.gmra.mxu1 %vm436_vm0, %v529_v60 }
  0xb2   : > { %2913 = vmatmul.msk.f32.gmra.mxu2 %vm436_vm0, %v545_v61  ;;  %2945 = vmatmul.msk.f32.gmra.mxu3 %vm436_vm0, %v561_v62  ;;  %v3630_v14 = vpop.permute.xlu1 %1590  ;;  %v3681_v62 = vld [vmem:[%s3382_s13 + $0x2] ss:$0 sm:$0xff] }
  0xb3   : > { %1655 = vperm.xlu1 %2983, %v1337_v63   ;;  %1575 = vperm.xlu0 %2982, %v1321_v0   ;;  %v3615_v3 = vpop.permute.xlu0 %1510 }
  0xb8   : > { %2850 = vmatmul.msk.f32.gmra.mxu0 %vm436_vm0, %v514_v4  ;;  %v3684_v4 = vld [vmem:[%s3382_s13 + $0x3] ss:$0 sm:$0xff] }
  0xb9   : > { %2882 = vmatmul.msk.f32.gmra.mxu1 %vm436_vm0, %v530_v5  ;;  %v3686_v5 = vpop.permute.xlu2 %1445 }
  0xba   : > { %2914 = vmatmul.msk.f32.gmra.mxu2 %vm436_vm0, %v546_v6  ;;  %2946 = vmatmul.msk.f32.gmra.mxu3 %vm436_vm0, %v562_v10  ;;  %v3652_v33 = vpop.permute.xlu1 %1595 }
  0xbb   : > { %1495 = vperm.xlu0 %2982, %v1305_v13   ;;  %v3632_v15 = vpop.permute.xlu0 %1515 }
  0xc0   : > { %2851 = vmatmul.msk.f32.gmra.mxu0 %vm436_vm0, %v515_v18 }
  0xc1   : > { %2883 = vmatmul.msk.f32.gmra.mxu1 %vm436_vm0, %v531_v20 }
  0xc2   : > { %2915 = vmatmul.msk.f32.gmra.mxu2 %vm436_vm0, %v547_v24  ;;  %2947 = vmatmul.msk.f32.gmra.mxu3 %vm436_vm0, %v563_v28 }
  0xc5   : > { %v3654_v34 = vpop.permute.xlu0 %1520  ;;  %v3675_v53 = vpop.permute.xlu1 %1600 }
  0xc8   : > { %2852 = vmatmul.msk.f32.gmra.mxu0 %vm436_vm0, %v516_v37 }
  0xc9   : > { %2884 = vmatmul.msk.f32.gmra.mxu1 %vm436_vm0, %v532_v38 }
  0xca   : > { %2916 = vmatmul.msk.f32.gmra.mxu2 %vm436_vm0, %v548_v39  ;;  %2948 = vmatmul.msk.f32.gmra.mxu3 %vm436_vm0, %v564_v40 }
  0xcd   : > { %v3669_v45 = vpop.permute.xlu0 %1525  ;;  %v743_v47 = vpop.f32.mrf.mxu0 }
  0xce   : > { %v1658_v50 = vsub.f32 %v743_v47, %v3495_v44  ;;  %v904_v51 = vpop.f32.mrf.mxu1  ;;  %v3696_v22 = vpop.permute.xlu1 %1605 }
  0xcf   : > { %v1674_v55 = vsub.f32 %v904_v51, %v3575_v35 }
  0xd0   : > { %v1738_v57 = vsub.f32 %v1658_v50, %v3667_v43 }
  0xd1   : > { %v1754_v59 = vsub.f32 %v1674_v55, %v3672_v49  ;;  %v3702_v55 = vpop.permute.xlu2 %1450 }
  0xd2   : > { %v1802_v60 = vmin.f32 %v1738_v57, 0.0 }
  0xd3   : > { %v1818_v61 = vmin.f32 %v1754_v59, 0.0 }
  0xd4   : > { %v1866_v63 = vmul.f32 1.442695, %v1802_v60  ;;  %v1065_v0 = vpop.f32.mrf.mxu2 }
  0xd5   : > { %v1898_v44 = vmul.f32 1.442695, %v1818_v61  ;;  %v1690_v6 = vsub.f32 %v1065_v0, %v3577_v36  ;;  %v1226_v10 = vpop.f32.mrf.mxu3  ;;  %v746_v11 = vpop.f32.mrf.mxu0 }
  0xd6   : > { %2989 = vpow2.f32 %v1866_v63  ;;  %v1706_v35 = vsub.f32 %v1226_v10, %v3586_v46  ;;  %v907_v12 = vpop.f32.mrf.mxu1  ;;  %v3690_v13 = vpop.permute.xlu0 %1530  ;;  %v1659_v17 = vsub.f32 %v746_v11, %v3516_v58 }
  0xd7   : > { %2991 = vpow2.f32 %v1898_v44  ;;  %v1770_v16 = vsub.f32 %v1690_v6, %v3681_v62  ;;  %v1675_v18 = vsub.f32 %v907_v12, %v3599_v54  ;;  %v3712_v10 = vpop.permute.xlu1 %1610 }
  0xd8   : > { %v1786_v20 = vsub.f32 %v1706_v35, %v3684_v4  ;;  %v1739_v23 = vsub.f32 %v1659_v17, %v3667_v43 }
  0xd9   : > { %v1834_v36 = vmin.f32 %v1770_v16, 0.0  ;;  %v1755_v46 = vsub.f32 %v1675_v18, %v3672_v49 }
  0xda   : > { %v1850_v24 = vmin.f32 %v1786_v20, 0.0  ;;  %v1803_v27 = vmin.f32 %v1739_v23, 0.0 }
  0xdb   : > { %v1930_v26 = vmul.f32 1.442695, %v1834_v36  ;;  %v1819_v28 = vmin.f32 %v1755_v46, 0.0 }
  0xdc   : > { %v2990_v30 = vpop.eup %2989  ;;  %v1962_v32 = vmul.f32 1.442695, %v1850_v24  ;;  %v1868_v58 = vmul.f32 1.442695, %v1803_v27 }
  0xdd   : > { %v1068_v37 = vpop.f32.mrf.mxu2  ;;  %v2992_v38 = vpop.eup %2991  ;;  %2993 = vpow2.f32 %v1930_v26  ;;  %v1900_v54 = vmul.f32 1.442695, %v1819_v28  ;;  %2138 = vmatmul.f32.vlgmr.msrb.gmra.mxu0 %v2990_v30 }
  0xde   : > { %v1691_v39 = vsub.f32 %v1068_v37, %v3596_v52  ;;  %v1229_v40 = vpop.f32.mrf.mxu3  ;;  %2995 = vpow2.f32 %v1962_v32  ;;  %v749_v50 = vpop.f32.mrf.mxu0  ;;  %2203 = vmatmul.f32.vlgmr.msrb.gmra.mxu1 %v2992_v38 }
  0xdf   : > { %v1707_v47 = vsub.f32 %v1229_v40, %v3610_v1  ;;  %v910_v51 = vpop.f32.mrf.mxu1  ;;  %2997 = vpow2.f32 %v1868_v58  ;;  %v1660_v59 = vsub.f32 %v749_v50, %v3492_v42  ;;  %v3708_v61 = vpop.permute.xlu0 %1535 }
  0xe0   : > { %v1771_v57 = vsub.f32 %v1691_v39, %v3681_v62  ;;  %v1676_v60 = vsub.f32 %v910_v51, %v3620_v9  ;;  %2999 = vpow2.f32 %v1900_v54  ;;  %v3720_v37 = vpop.permute.xlu2 %1455 }
  0xe1   : > { %v1787_v52 = vsub.f32 %v1707_v47, %v3684_v4  ;;  %v1740_v1 = vsub.f32 %v1660_v59, %v3667_v43 }
  0xe2   : > { %v1835_v63 = vmin.f32 %v1771_v57, 0.0  ;;  %v1756_v0 = vsub.f32 %v1676_v60, %v3672_v49  ;;  %v3726_v60 = vpop.permute.xlu1 %1615 }
  0xe3   : > { %v1851_v44 = vmin.f32 %v1787_v52, 0.0  ;;  %v2994_v6 = vpop.eup %2993  ;;  %v1804_v11 = vmin.f32 %v1740_v1, 0.0 }
  0xe4   : > { %v1932_v35 = vmul.f32 1.442695, %v1835_v63  ;;  %v1820_v12 = vmin.f32 %v1756_v0, 0.0  ;;  %v2996_v42 = vpop.eup %2995  ;;  %2268 = vmatmul.f32.vlgmr.msrb.gmra.mxu2 %v2994_v6 }
  0xe5   : > { %v1964_v16 = vmul.f32 1.442695, %v1851_v44  ;;  %v1071_v9 = vpop.f32.mrf.mxu2  ;;  %v2998_v17 = vpop.eup %2997  ;;  %v1870_v18 = vmul.f32 1.442695, %v1804_v11  ;;  %2333 = vmatmul.f32.vlgmr.msrb.gmra.mxu3 %v2996_v42 }
  0xe6   : > { %3001 = vpow2.f32 %v1932_v35  ;;  %v1902_v20 = vmul.f32 1.442695, %v1820_v12  ;;  %v1692_v36 = vsub.f32 %v1071_v9, %v3615_v3  ;;  %v1232_v23 = vpop.f32.mrf.mxu3  ;;  %v3000_v46 = vpop.eup %2999  ;;  %2141 = vmatmul.f32.gmra.mxu0 %v2998_v17 }
  0xe7   : > { %3003 = vpow2.f32 %v1964_v16  ;;  %v1708_v24 = vsub.f32 %v1232_v23, %v3630_v14  ;;  %v752_v26 = vpop.f32.mrf.mxu0  ;;  %v913_v27 = vpop.f32.mrf.mxu1  ;;  %2206 = vmatmul.f32.gmra.mxu1 %v3000_v46 }
  0xe8   : > { %3005 = vpow2.f32 %v1870_v18  ;;  %v1772_v28 = vsub.f32 %v1692_v36, %v3681_v62  ;;  %v1661_v30 = vsub.f32 %v752_v26, %v3513_v56  ;;  %v1677_v32 = vsub.f32 %v913_v27, %v3645_v29  ;;  %v3724_v40 = vpop.permute.xlu0 %1540  ;;  %v3736_v36 = vpop.permute.xlu2 %1460 }
  0xe9   : > { %3007 = vpow2.f32 %v1902_v20  ;;  %v1788_v3 = vsub.f32 %v1708_v24, %v3684_v4 }
  0xea   : > { %v1836_v38 = vmin.f32 %v1772_v28, 0.0  ;;  %v1741_v58 = vsub.f32 %v1661_v30, %v3667_v43  ;;  %v1757_v14 = vsub.f32 %v1677_v32, %v3672_v49 }
  0xeb   : > { %v1852_v54 = vmin.f32 %v1788_v3, 0.0 }
  0xec   : > { %v3002_v39 = vpop.eup %3001  ;;  %v1934_v47 = vmul.f32 1.442695, %v1836_v38  ;;  %v1805_v50 = vmin.f32 %v1741_v58, 0.0  ;;  %v1821_v56 = vmin.f32 %v1757_v14, 0.0 }
  0xed   : > { %v3004_v51 = vpop.eup %3003  ;;  %v1966_v29 = vmul.f32 1.442695, %v1852_v54  ;;  %v1074_v57 = vpop.f32.mrf.mxu2  ;;  %2271 = vmatmul.f32.gmra.mxu2 %v3002_v39 }
  0xee   : > { %v3006_v59 = vpop.eup %3005  ;;  %3009 = vpow2.f32 %v1934_v47  ;;  %v1872_v52 = vmul.f32 1.442695, %v1805_v50  ;;  %v1904_v63 = vmul.f32 1.442695, %v1821_v56  ;;  %v1693_v1 = vsub.f32 %v1074_v57, %v3632_v15  ;;  %v1235_v0 = vpop.f32.mrf.mxu3  ;;  %2336 = vmatmul.f32.gmra.mxu3 %v3004_v51 }
  0xef   : > { %v3008_v44 = vpop.eup %3007  ;;  %3011 = vpow2.f32 %v1966_v29  ;;  %v1709_v6 = vsub.f32 %v1235_v0, %v3652_v33  ;;  %v755_v35 = vpop.f32.mrf.mxu0  ;;  %2144 = vmatmul.f32.gmra.mxu0 %v3006_v59 }
  0xf0   : > { %v916_v11 = vpop.f32.mrf.mxu1  ;;  %3013 = vpow2.f32 %v1872_v52  ;;  %v1773_v12 = vsub.f32 %v1693_v1, %v3681_v62  ;;  %v1662_v42 = vsub.f32 %v755_v35, %v3476_v31  ;;  %2209 = vmatmul.f32.gmra.mxu1 %v3008_v44  ;;  %v3738_v28 = vpop.permute.xlu0 %1545 }
  0xf1   : > { %v1678_v16 = vsub.f32 %v916_v11, %v3664_v41  ;;  %3015 = vpow2.f32 %v1904_v63  ;;  %v1789_v15 = vsub.f32 %v1709_v6, %v3684_v4  ;;  %v3742_v47 = vpop.permute.xlu1 %1620 }
  0xf2   : > { %v1837_v9 = vmin.f32 %v1773_v12, 0.0  ;;  %v1742_v17 = vsub.f32 %v1662_v42, %v3667_v43 }
  0xf3   : > { %v1758_v18 = vsub.f32 %v1678_v16, %v3672_v49  ;;  %v1853_v33 = vmin.f32 %v1789_v15, 0.0 }
  0xf4   : > { %v3010_v20 = vpop.eup %3009  ;;  %v1936_v23 = vmul.f32 1.442695, %v1837_v9  ;;  %v1806_v46 = vmin.f32 %v1742_v17, 0.0 }
  0xf5   : > { %v1822_v24 = vmin.f32 %v1758_v18, 0.0  ;;  %v3012_v26 = vpop.eup %3011  ;;  %v1968_v31 = vmul.f32 1.442695, %v1853_v33  ;;  %v1077_v27 = vpop.f32.mrf.mxu2  ;;  %2274 = vmatmul.f32.gmra.mxu2 %v3010_v20 }
  0xf6   : > { %v3014_v41 = vpop.eup %3013  ;;  %3017 = vpow2.f32 %v1936_v23  ;;  %v1874_v30 = vmul.f32 1.442695, %v1806_v46  ;;  %v1694_v3 = vsub.f32 %v1077_v27, %v3654_v34  ;;  %v1238_v38 = vpop.f32.mrf.mxu3  ;;  %2339 = vmatmul.f32.gmra.mxu3 %v3012_v26 }
  0xf7   : > { %v1906_v32 = vmul.f32 1.442695, %v1822_v24  ;;  %v3016_v58 = vpop.eup %3015  ;;  %3019 = vpow2.f32 %v1968_v31  ;;  %v1710_v14 = vsub.f32 %v1238_v38, %v3675_v53  ;;  %v758_v54 = vpop.f32.mrf.mxu0  ;;  %2147 = vmatmul.f32.gmra.mxu0 %v3014_v41 }
  0xf8   : > { %v919_v39 = vpop.f32.mrf.mxu1  ;;  %3021 = vpow2.f32 %v1874_v30  ;;  %v1774_v50 = vsub.f32 %v1694_v3, %v3681_v62  ;;  %v1663_v56 = vsub.f32 %v758_v54, %v3500_v48  ;;  %2212 = vmatmul.f32.gmra.mxu1 %v3016_v58  ;;  %v3754_v33 = vpop.permute.xlu0 %1550 }
  0xf9   : > { %v1679_v51 = vsub.f32 %v919_v39, %v3686_v5  ;;  %3023 = vpow2.f32 %v1906_v32  ;;  %v1790_v34 = vsub.f32 %v1710_v14, %v3684_v4  ;;  %v3750_v5 = vpop.permute.xlu2 %1465  ;;  %v3760_v24 = vpop.permute.xlu1 %1625 }
  0xfa   : > { %v1838_v29 = vmin.f32 %v1774_v50, 0.0  ;;  %v1743_v57 = vsub.f32 %v1663_v56, %v3667_v43 }
  0xfb   : > { %v1759_v53 = vsub.f32 %v1679_v51, %v3672_v49  ;;  %v1854_v59 = vmin.f32 %v1790_v34, 0.0 }
  0xfc   : > { %v3018_v52 = vpop.eup %3017  ;;  %v1938_v63 = vmul.f32 1.442695, %v1838_v29  ;;  %v1807_v1 = vmin.f32 %v1743_v57, 0.0 }
  0xfd   : > { %v1823_v0 = vmin.f32 %v1759_v53, 0.0  ;;  %v3020_v44 = vpop.eup %3019  ;;  %v1970_v6 = vmul.f32 1.442695, %v1854_v59  ;;  %v1080_v35 = vpop.f32.mrf.mxu2  ;;  %2277 = vmatmul.f32.gmra.mxu2 %v3018_v52 }
  0xfe   : > { %v3022_v48 = vpop.eup %3021  ;;  %3025 = vpow2.f32 %v1938_v63  ;;  %v1876_v11 = vmul.f32 1.442695, %v1807_v1  ;;  %v1695_v42 = vsub.f32 %v1080_v35, %v3669_v45  ;;  %v1241_v16 = vpop.f32.mrf.mxu3  ;;  %2342 = vmatmul.f32.gmra.mxu3 %v3020_v44 }
  0xff   : > { %v1908_v12 = vmul.f32 1.442695, %v1823_v0  ;;  %v3024_v15 = vpop.eup %3023  ;;  %3027 = vpow2.f32 %v1970_v6  ;;  %v1711_v9 = vsub.f32 %v1241_v16, %v3696_v22  ;;  %v761_v17 = vpop.f32.mrf.mxu0  ;;  %2150 = vmatmul.f32.gmra.mxu0 %v3022_v48 }
 0x100   : > { %v922_v18 = vpop.f32.mrf.mxu1  ;;  %3029 = vpow2.f32 %v1876_v11  ;;  %v1775_v20 = vsub.f32 %v1695_v42, %v3681_v62  ;;  %v1664_v23 = vsub.f32 %v761_v17, %v3537_v8  ;;  %2215 = vmatmul.f32.gmra.mxu1 %v3024_v15  ;;  %v3772_v63 = vpop.permute.xlu0 %1555 }
 0x101   : > { %v1680_v46 = vsub.f32 %v922_v18, %v3702_v55  ;;  %3031 = vpow2.f32 %v1908_v12  ;;  %v1791_v45 = vsub.f32 %v1711_v9, %v3684_v4  ;;  %v3766_v57 = vpop.permute.xlu2 %1470  ;;  %v3776_v35 = vpop.permute.xlu1 %1630 }
 0x102   : > { %v1839_v26 = vmin.f32 %v1775_v20, 0.0  ;;  %v1744_v22 = vsub.f32 %v1664_v23, %v3667_v43 }
 0x103   : > { %v1760_v31 = vsub.f32 %v1680_v46, %v3672_v49  ;;  %v1855_v27 = vmin.f32 %v1791_v45, 0.0 }
 0x104   : > { %v3026_v41 = vpop.eup %3025  ;;  %v1940_v30 = vmul.f32 1.442695, %v1839_v26  ;;  %v1808_v32 = vmin.f32 %v1744_v22, 0.0 }
 0x105   : > { %v1824_v3 = vmin.f32 %v1760_v31, 0.0  ;;  %v3028_v38 = vpop.eup %3027  ;;  %v1972_v8 = vmul.f32 1.442695, %v1855_v27  ;;  %v1083_v58 = vpop.f32.mrf.mxu2  ;;  %2280 = vmatmul.f32.gmra.mxu2 %v3026_v41 }
 0x106   : > { %v3030_v55 = vpop.eup %3029  ;;  %3033 = vpow2.f32 %v1940_v30  ;;  %v1878_v14 = vmul.f32 1.442695, %v1808_v32  ;;  %v1696_v39 = vsub.f32 %v1083_v58, %v3690_v13  ;;  %v1244_v50 = vpop.f32.mrf.mxu3  ;;  %2345 = vmatmul.f32.gmra.mxu3 %v3028_v38 }
 0x107   : > { %v1910_v54 = vmul.f32 1.442695, %v1824_v3  ;;  %v3032_v56 = vpop.eup %3031  ;;  %3035 = vpow2.f32 %v1972_v8  ;;  %v1712_v51 = vsub.f32 %v1244_v50, %v3712_v10  ;;  %v764_v34 = vpop.f32.mrf.mxu0  ;;  %2153 = vmatmul.f32.gmra.mxu0 %v3030_v55 }
 0x108   : > { %v925_v29 = vpop.f32.mrf.mxu1  ;;  %3037 = vpow2.f32 %v1878_v14  ;;  %v1776_v53 = vsub.f32 %v1696_v39, %v3681_v62  ;;  %v1665_v59 = vsub.f32 %v764_v34, %v3535_v7  ;;  %2218 = vmatmul.f32.gmra.mxu1 %v3032_v56  ;;  %v3788_v38 = vpop.permute.xlu0 %1560 }
 0x109   : > { %v1681_v52 = vsub.f32 %v925_v29, %v3720_v37  ;;  %3039 = vpow2.f32 %v1910_v54  ;;  %v1792_v13 = vsub.f32 %v1712_v51, %v3684_v4  ;;  %v3784_v27 = vpop.permute.xlu2 %1475  ;;  %v3790_v39 = vpop.permute.xlu1 %1635 }
 0x10a   : > { %v1840_v1 = vmin.f32 %v1776_v53, 0.0  ;;  %v1745_v10 = vsub.f32 %v1665_v59, %v3667_v43 }
 0x10b   : > { %v1761_v0 = vsub.f32 %v1681_v52, %v3672_v49  ;;  %v1856_v44 = vmin.f32 %v1792_v13, 0.0 }
 0x10c   : > { %v3034_v6 = vpop.eup %3033  ;;  %v1942_v48 = vmul.f32 1.442695, %v1840_v1  ;;  %v1809_v11 = vmin.f32 %v1745_v10, 0.0 }
 0x10d   : > { %v1825_v7 = vmin.f32 %v1761_v0, 0.0  ;;  %v3036_v12 = vpop.eup %3035  ;;  %v1974_v37 = vmul.f32 1.442695, %v1856_v44  ;;  %v1086_v42 = vpop.f32.mrf.mxu2  ;;  %2283 = vmatmul.f32.gmra.mxu2 %v3034_v6 }
 0x10e   : > { %v3038_v16 = vpop.eup %3037  ;;  %3041 = vpow2.f32 %v1942_v48  ;;  %v1880_v15 = vmul.f32 1.442695, %v1809_v11  ;;  %v1697_v17 = vsub.f32 %v1086_v42, %v3708_v61  ;;  %v1247_v18 = vpop.f32.mrf.mxu3  ;;  %2348 = vmatmul.f32.gmra.mxu3 %v3036_v12 }
 0x10f   : > { %v1912_v9 = vmul.f32 1.442695, %v1825_v7  ;;  %v3040_v20 = vpop.eup %3039  ;;  %3043 = vpow2.f32 %v1974_v37  ;;  %v1713_v23 = vsub.f32 %v1247_v18, %v3726_v60  ;;  %v767_v46 = vpop.f32.mrf.mxu0  ;;  %2156 = vmatmul.f32.gmra.mxu0 %v3038_v16 }
 0x110   : > { %v928_v45 = vpop.f32.mrf.mxu1  ;;  %3045 = vpow2.f32 %v1880_v15  ;;  %v1777_v26 = vsub.f32 %v1697_v17, %v3681_v62  ;;  %v1666_v22 = vsub.f32 %v767_v46, %v3525_v2  ;;  %2221 = vmatmul.f32.gmra.mxu1 %v3040_v20  ;;  %v3802_v15 = vpop.permute.xlu0 %1480 }
 0x111   : > { %v1682_v31 = vsub.f32 %v928_v45, %v3736_v36  ;;  %3047 = vpow2.f32 %v1912_v9  ;;  %v1793_v61 = vsub.f32 %v1713_v23, %v3684_v4  ;;  %v3800_v11 = vpop.permute.xlu2 %1400 }
 0x112   : > { %v1841_v41 = vmin.f32 %v1777_v26, 0.0  ;;  %v1746_v30 = vsub.f32 %v1666_v22, %v3667_v43  ;;  %v3806_v22 = vpop.permute.xlu1 %1640 }
 0x113   : > { %v1762_v60 = vsub.f32 %v1682_v31, %v3672_v49  ;;  %v1857_v32 = vmin.f32 %v1793_v61, 0.0 }
 0x114   : > { %v3042_v3 = vpop.eup %3041  ;;  %v1944_v8 = vmul.f32 1.442695, %v1841_v41  ;;  %v1810_v58 = vmin.f32 %v1746_v30, 0.0 }
 0x115   : > { %v1826_v2 = vmin.f32 %v1762_v60, 0.0  ;;  %v3044_v55 = vpop.eup %3043  ;;  %v1976_v36 = vmul.f32 1.442695, %v1857_v32  ;;  %v1089_v14 = vpop.f32.mrf.mxu2  ;;  %2286 = vmatmul.f32.gmra.mxu2 %v3042_v3 }
 0x116   : > { %v3046_v54 = vpop.eup %3045  ;;  %3049 = vpow2.f32 %v1944_v8  ;;  %v1882_v50 = vmul.f32 1.442695, %v1810_v58  ;;  %v1698_v51 = vsub.f32 %v1089_v14, %v3724_v40  ;;  %v1250_v34 = vpop.f32.mrf.mxu3  ;;  %2351 = vmatmul.f32.gmra.mxu3 %v3044_v55 }
 0x117   : > { %v1914_v56 = vmul.f32 1.442695, %v1826_v2  ;;  %v3048_v29 = vpop.eup %3047  ;;  %3051 = vpow2.f32 %v1976_v36  ;;  %v1714_v53 = vsub.f32 %v1250_v34, %v3742_v47  ;;  %v770_v59 = vpop.f32.mrf.mxu0  ;;  %2159 = vmatmul.f32.gmra.mxu0 %v3046_v54 }
 0x118   : > { %v931_v52 = vpop.f32.mrf.mxu1  ;;  %3053 = vpow2.f32 %v1882_v50  ;;  %v1778_v13 = vsub.f32 %v1698_v51, %v3681_v62  ;;  %v1667_v1 = vsub.f32 %v770_v59, %v3556_v21  ;;  %2224 = vmatmul.f32.gmra.mxu1 %v3048_v29 }
 0x119   : > { %v1683_v10 = vsub.f32 %v931_v52, %v3750_v5  ;;  %3055 = vpow2.f32 %v1914_v56  ;;  %v1794_v40 = vsub.f32 %v1714_v53, %v3684_v4  ;;  %v3818_v52 = vpop.permute.xlu0 %1405 }
 0x11a   : > { %v1842_v0 = vmin.f32 %v1778_v13, 0.0  ;;  %v1747_v44 = vsub.f32 %v1667_v1, %v3667_v43 }
 0x11b   : > { %v1763_v6 = vsub.f32 %v1683_v10, %v3672_v49  ;;  %v1858_v47 = vmin.f32 %v1794_v40, 0.0  ;;  %v3824_v40 = vpop.permute.xlu1 %1565 }
 0x11c   : > { %v3050_v48 = vpop.eup %3049  ;;  %v1946_v7 = vmul.f32 1.442695, %v1842_v0  ;;  %v1811_v12 = vmin.f32 %v1747_v44, 0.0 }
 0x11d   : > { %v1827_v37 = vmin.f32 %v1763_v6, 0.0  ;;  %v3052_v42 = vpop.eup %3051  ;;  %v1978_v21 = vmul.f32 1.442695, %v1858_v47  ;;  %v1092_v16 = vpop.f32.mrf.mxu2  ;;  %2289 = vmatmul.f32.gmra.mxu2 %v3050_v48 }
 0x11e   : > { %v3054_v5 = vpop.eup %3053  ;;  %3057 = vpow2.f32 %v1946_v7  ;;  %v1884_v9 = vmul.f32 1.442695, %v1811_v12  ;;  %v1699_v18 = vsub.f32 %v1092_v16, %v3738_v28  ;;  %v1253_v20 = vpop.f32.mrf.mxu3  ;;  %2354 = vmatmul.f32.gmra.mxu3 %v3052_v42 }
 0x11f   : > { %v1916_v17 = vmul.f32 1.442695, %v1827_v37  ;;  %v3056_v23 = vpop.eup %3055  ;;  %3059 = vpow2.f32 %v1978_v21  ;;  %v1715_v46 = vsub.f32 %v1253_v20, %v3760_v24  ;;  %v773_v45 = vpop.f32.mrf.mxu0  ;;  %2162 = vmatmul.f32.gmra.mxu0 %v3054_v5 }
 0x120   : > { %v934_v26 = vpop.f32.mrf.mxu1  ;;  %3061 = vpow2.f32 %v1884_v9  ;;  %v1779_v31 = vsub.f32 %v1699_v18, %v3681_v62  ;;  %v1668_v61 = vsub.f32 %v773_v45, %v3561_v25  ;;  %2227 = vmatmul.f32.gmra.mxu1 %v3056_v23 }
 0x121   : > { %v1684_v41 = vsub.f32 %v934_v26, %v3766_v57  ;;  %3063 = vpow2.f32 %v1916_v17  ;;  %v1795_v28 = vsub.f32 %v1715_v46, %v3684_v4  ;;  %v3814_v57 = vpop.permute.xlu2 %1645 }
 0x122   : > { %v1843_v30 = vmin.f32 %v1779_v31, 0.0  ;;  %v1748_v60 = vsub.f32 %v1668_v61, %v3667_v43  ;;  %v3836_v61 = vpop.permute.xlu0 %1650 }
 0x123   : > { %v1764_v24 = vsub.f32 %v1684_v41, %v3672_v49  ;;  %v1859_v32 = vmin.f32 %v1795_v28, 0.0 }
 0x124   : > { %v3058_v3 = vpop.eup %3057  ;;  %v1948_v8 = vmul.f32 1.442695, %v1843_v30  ;;  %v1812_v58 = vmin.f32 %v1748_v60, 0.0 }
 0x125   : > { %v1828_v2 = vmin.f32 %v1764_v24, 0.0  ;;  %v3060_v55 = vpop.eup %3059  ;;  %v1980_v36 = vmul.f32 1.442695, %v1859_v32  ;;  %v1095_v14 = vpop.f32.mrf.mxu2  ;;  %2292 = vmatmul.f32.gmra.mxu2 %v3058_v3 }
 0x126   : > { %v3062_v25 = vpop.eup %3061  ;;  %3065 = vpow2.f32 %v1948_v8  ;;  %v1886_v54 = vmul.f32 1.442695, %v1812_v58  ;;  %v1700_v56 = vsub.f32 %v1095_v14, %v3754_v33  ;;  %v1256_v51 = vpop.f32.mrf.mxu3  ;;  %2357 = vmatmul.f32.gmra.mxu3 %v3060_v55 }
 0x127   : > { %v1918_v50 = vmul.f32 1.442695, %v1828_v2  ;;  %v3064_v34 = vpop.eup %3063  ;;  %3067 = vpow2.f32 %v1980_v36  ;;  %v1716_v29 = vsub.f32 %v1256_v51, %v3776_v35  ;;  %v776_v53 = vpop.f32.mrf.mxu0  ;;  %2165 = vmatmul.f32.gmra.mxu0 %v3062_v25 }
 0x128   : > { %v937_v59 = vpop.f32.mrf.mxu1  ;;  %3069 = vpow2.f32 %v1886_v54  ;;  %v1780_v13 = vsub.f32 %v1700_v56, %v3681_v62  ;;  %v1669_v1 = vsub.f32 %v776_v53, %v3550_v19  ;;  %2230 = vmatmul.f32.gmra.mxu1 %v3064_v34  ;;  %v1486_v24 = vpop.permute.xlu1 %1485  ;;  %v3146_v54 = vmov 0.0  }
 0x129   : > { %v1685_v10 = vsub.f32 %v937_v59, %v3784_v27  ;;  %3071 = vpow2.f32 %v1918_v50  ;;  %v1796_v33 = vsub.f32 %v1716_v29, %v3684_v4  ;;  %v3833_v31 = vpop.permute.xlu2 %1570  ;;  %437 = vst.msk [vmem:[#allocation2] sm:$0xff] %vm436_vm0, %v3146_v54 }
 0x12a   : > { %v1844_v0 = vmin.f32 %v1780_v13, 0.0  ;;  %v1749_v35 = vsub.f32 %v1669_v1, %v3667_v43  ;;  %438 = vst.msk [vmem:[#allocation2 + $0x8] sm:$0xff] %vm436_vm0, %v3146_v54 }
 0x12b   : > { %v1765_v44 = vsub.f32 %v1685_v10, %v3672_v49  ;;  %v1860_v6 = vmin.f32 %v1796_v33, 0.0  ;;  %439 = vst.msk [vmem:[#allocation2 + $0x10] sm:$0xff] %vm436_vm0, %v3146_v54 }
 0x12c   : > { %v3066_v47 = vpop.eup %3065  ;;  %v1950_v48 = vmul.f32 1.442695, %v1844_v0  ;;  %v1813_v7 = vmin.f32 %v1749_v35, 0.0  ;;  %440 = vst.msk [vmem:[#allocation2 + $0x18] sm:$0xff] %vm436_vm0, %v3146_v54  ;;  %v3859_v0 = vpop.permute.xlu0 %1575 }
 0x12d   : > { %v1829_v12 = vmin.f32 %v1765_v44, 0.0  ;;  %v3068_v37 = vpop.eup %3067  ;;  %v1982_v19 = vmul.f32 1.442695, %v1860_v6  ;;  %v1098_v42 = vpop.f32.mrf.mxu2  ;;  %2295 = vmatmul.f32.gmra.mxu2 %v3066_v47  ;;  %441 = vst.msk [vmem:[#allocation2 + $0x20] sm:$0xff] %vm436_vm0, %v3146_v54 }
 0x12e   : > { %v3070_v27 = vpop.eup %3069  ;;  %3073 = vpow2.f32 %v1950_v48  ;;  %v1888_v21 = vmul.f32 1.442695, %v1813_v7  ;;  %v1701_v5 = vsub.f32 %v1098_v42, %v3772_v63  ;;  %v1259_v9 = vpop.f32.mrf.mxu3  ;;  %2360 = vmatmul.f32.gmra.mxu3 %v3068_v37  ;;  %442 = vst.msk [vmem:[#allocation2 + $0x28] sm:$0xff] %vm436_vm0, %v3146_v54 }
 0x12f   : > { %v1920_v16 = vmul.f32 1.442695, %v1829_v12  ;;  %v3072_v17 = vpop.eup %3071  ;;  %3075 = vpow2.f32 %v1982_v19  ;;  %v1717_v18 = vsub.f32 %v1259_v9, %v3790_v39  ;;  %v779_v20 = vpop.f32.mrf.mxu0  ;;  %2168 = vmatmul.f32.gmra.mxu0 %v3070_v27  ;;  %443 = vst.msk [vmem:[#allocation2 + $0x30] sm:$0xff] %vm436_vm0, %v3146_v54 }
 0x130   : > { %v940_v23 = vpop.f32.mrf.mxu1  ;;  %3077 = vpow2.f32 %v1888_v21  ;;  %v1781_v46 = vsub.f32 %v1701_v5, %v3681_v62  ;;  %v1670_v45 = vsub.f32 %v779_v20, %v3800_v11  ;;  %2233 = vmatmul.f32.gmra.mxu1 %v3072_v17  ;;  %444 = vst.msk [vmem:[#allocation2 + $0x38] sm:$0xff] %vm436_vm0, %v3146_v54  ;;  %v1411_v37 = vpop.permute.xlu1 %1410 }
 0x131   : > { %v1686_v26 = vsub.f32 %v940_v23, %v3802_v15  ;;  %3079 = vpow2.f32 %v1920_v16  ;;  %v1797_v63 = vsub.f32 %v1717_v18, %v3684_v4  ;;  %445 = vst.msk [vmem:[#allocation2 + $0x40] sm:$0xff] %vm436_vm0, %v3146_v54 }
 0x132   : > { %v1845_v41 = vmin.f32 %v1781_v46, 0.0  ;;  %v1750_v39 = vsub.f32 %v1670_v45, %v3667_v43  ;;  %446 = vst.msk [vmem:[#allocation2 + $0x48] sm:$0xff] %vm436_vm0, %v3146_v54 }
 0x133   : > { %v1766_v28 = vsub.f32 %v1686_v26, %v3672_v49  ;;  %v1861_v30 = vmin.f32 %v1797_v63, 0.0  ;;  %447 = vst.msk [vmem:[#allocation2 + $0x50] sm:$0xff] %vm436_vm0, %v3146_v54 }
 0x134   : > { %v3074_v60 = vpop.eup %3073  ;;  %v1952_v32 = vmul.f32 1.442695, %v1845_v41  ;;  %v1814_v11 = vmin.f32 %v1750_v39, 0.0  ;;  %448 = vst.msk [vmem:[#allocation2 + $0x58] sm:$0xff] %vm436_vm0, %v3146_v54 }
 0x135   : > { %v1830_v3 = vmin.f32 %v1766_v28, 0.0  ;;  %v3076_v15 = vpop.eup %3075  ;;  %v1984_v8 = vmul.f32 1.442695, %v1861_v30  ;;  %v1101_v58 = vpop.f32.mrf.mxu2  ;;  %2298 = vmatmul.f32.gmra.mxu2 %v3074_v60  ;;  %449 = vst.msk [vmem:[#allocation2 + $0x60] sm:$0xff] %vm436_vm0, %v3146_v54 }
 0x136   : > { %v3078_v2 = vpop.eup %3077  ;;  %3081 = vpow2.f32 %v1952_v32  ;;  %v1890_v55 = vmul.f32 1.442695, %v1814_v11  ;;  %v1702_v14 = vsub.f32 %v1101_v58, %v3788_v38  ;;  %v1262_v25 = vpop.f32.mrf.mxu3  ;;  %2363 = vmatmul.f32.gmra.mxu3 %v3076_v15  ;;  %450 = vst.msk [vmem:[#allocation2 + $0x68] sm:$0xff] %vm436_vm0, %v3146_v54 }
 0x137   : > { %v1922_v36 = vmul.f32 1.442695, %v1830_v3  ;;  %v3080_v50 = vpop.eup %3079  ;;  %3083 = vpow2.f32 %v1984_v8  ;;  %v1718_v56 = vsub.f32 %v1262_v25, %v3806_v22  ;;  %v782_v51 = vpop.f32.mrf.mxu0  ;;  %2171 = vmatmul.f32.gmra.mxu0 %v3078_v2  ;;  %451 = vst.msk [vmem:[#allocation2 + $0x70] sm:$0xff] %vm436_vm0, %v3146_v54 }
 0x138   : > { %v943_v34 = vpop.f32.mrf.mxu1  ;;  %3085 = vpow2.f32 %v1890_v55  ;;  %v1782_v29 = vsub.f32 %v1702_v14, %v3681_v62  ;;  %v1671_v38 = vsub.f32 %v782_v51, %v3818_v52  ;;  %2236 = vmatmul.f32.gmra.mxu1 %v3080_v50  ;;  %v1491_v52 = vpop.permute.xlu2 %1490  ;;  %452 = vst.msk [vmem:[#allocation2 + $0x78] sm:$0xff] %vm436_vm0, %v3146_v54 }
 0x139   : > { %v1687_v53 = vsub.f32 %v943_v34, %v1486_v24  ;;  %3087 = vpow2.f32 %v1922_v36  ;;  %v1798_v59 = vsub.f32 %v1718_v56, %v3684_v4  ;;  %v1496_v32 = vpop.permute.xlu0 %1495  ;;  %453 = vst.msk [vmem:[#allocation2 + $0x80] sm:$0xff] %vm436_vm0, %v3146_v54  ;;  %v3117_v56 = vld [vmem:[%s3382_s13] ss:$0 sm:$0xff]  ;;  %v3118_v34 = vld [vmem:[%s3382_s13 + $0x1] ss:$0 sm:$0xff] }
 0x13a   : > { %v1846_v22 = vmin.f32 %v1782_v29, 0.0  ;;  %v1751_v13 = vsub.f32 %v1671_v38, %v3667_v43  ;;  %454 = vst.msk [vmem:[#allocation2 + $0x88] sm:$0xff] %vm436_vm0, %v3146_v54 }
 0x13b   : > { %v1767_v1 = vsub.f32 %v1687_v53, %v3672_v49  ;;  %v1862_v10 = vmin.f32 %v1798_v59, 0.0  ;;  %455 = vst.msk [vmem:[#allocation2 + $0x90] sm:$0xff] %vm436_vm0, %v3146_v54 }
 0x13c   : > { %v3082_v33 = vpop.eup %3081  ;;  %v1954_v35 = vmul.f32 1.442695, %v1846_v22  ;;  %v1815_v44 = vmin.f32 %v1751_v13, 0.0  ;;  %456 = vst.msk [vmem:[#allocation2 + $0x98] sm:$0xff] %vm436_vm0, %v3146_v54 }
 0x13d   : > { %v1831_v6 = vmin.f32 %v1767_v1, 0.0  ;;  %v3084_v47 = vpop.eup %3083  ;;  %v1986_v48 = vmul.f32 1.442695, %v1862_v10  ;;  %v1104_v7 = vpop.f32.mrf.mxu2  ;;  %2301 = vmatmul.f32.gmra.mxu2 %v3082_v33  ;;  %457 = vst.msk [vmem:[#allocation2 + $0xa0] sm:$0xff] %vm436_vm0, %v3146_v54 }
 0x13e   : > { %v3086_v12 = vpop.eup %3085  ;;  %3089 = vpow2.f32 %v1954_v35  ;;  %v1892_v19 = vmul.f32 1.442695, %v1815_v44  ;;  %v1703_v27 = vsub.f32 %v1104_v7, %v3824_v40  ;;  %v1265_v21 = vpop.f32.mrf.mxu3  ;;  %2366 = vmatmul.f32.gmra.mxu3 %v3084_v47  ;;  %458 = vst.msk [vmem:[#allocation2 + $0xa8] sm:$0xff] %vm436_vm0, %v3146_v54  ;;  %v3119_v7 = vld [vmem:[%s3382_s13 + $0x2] ss:$0 sm:$0xff] }
 0x13f   : > { %v1924_v42 = vmul.f32 1.442695, %v1831_v6  ;;  %v3088_v16 = vpop.eup %3087  ;;  %3091 = vpow2.f32 %v1986_v48  ;;  %v1719_v5 = vsub.f32 %v1265_v21, %v3814_v57  ;;  %v785_v9 = vpop.f32.mrf.mxu0  ;;  %2174 = vmatmul.f32.gmra.mxu0 %v3086_v12  ;;  %459 = vst.msk [vmem:[#allocation2 + $0xb0] sm:$0xff] %vm436_vm0, %v3146_v54 }
 0x140   : > { %v946_v17 = vpop.f32.mrf.mxu1  ;;  %3093 = vpow2.f32 %v1892_v19  ;;  %v1783_v18 = vsub.f32 %v1703_v27, %v3681_v62  ;;  %v1672_v20 = vsub.f32 %v785_v9, %v1411_v37  ;;  %2239 = vmatmul.f32.gmra.mxu1 %v3088_v16  ;;  %v1416_v60 = vpop.permute.xlu2 %1415  ;;  %460 = vst.msk [vmem:[#allocation2 + $0xb8] sm:$0xff] %vm436_vm0, %v3146_v54 }
 0x141   : > { %v1688_v40 = vsub.f32 %v946_v17, %v1491_v52  ;;  %3095 = vpow2.f32 %v1924_v42  ;;  %v1799_v23 = vsub.f32 %v1719_v5, %v3684_v4  ;;  %v1656_v10 = vpop.permute.xlu1 %1655  ;;  %461 = vst.msk [vmem:[#allocation2 + $0xc0] sm:$0xff] %vm436_vm0, %v3146_v54 }
 0x142   : > { %v1847_v57 = vmin.f32 %v1783_v18, 0.0  ;;  %v1752_v46 = vsub.f32 %v1672_v20, %v3667_v43  ;;  %462 = vst.msk [vmem:[#allocation2 + $0xc8] sm:$0xff] %vm436_vm0, %v3146_v54  ;;  %v1994_v18 = vld [vmem:[#allocation2] sm:$0xff] }
 0x143   : > { %v1768_v45 = vsub.f32 %v1688_v40, %v3672_v49  ;;  %v1863_v26 = vmin.f32 %v1799_v23, 0.0  ;;  %463 = vst.msk [vmem:[#allocation2 + $0xd0] sm:$0xff] %vm436_vm0, %v3146_v54 }
 0x144   : > { %v3090_v63 = vpop.eup %3089  ;;  %v1956_v41 = vmul.f32 1.442695, %v1847_v57  ;;  %v1816_v39 = vmin.f32 %v1752_v46, 0.0  ;;  %464 = vst.msk [vmem:[#allocation2 + $0xd8] sm:$0xff] %vm436_vm0, %v3146_v54 }
 0x145   : > { %v1832_v28 = vmin.f32 %v1768_v45, 0.0  ;;  %v3092_v30 = vpop.eup %3091  ;;  %v1988_v24 = vmul.f32 1.442695, %v1863_v26  ;;  %v1107_v43 = vpop.f32.mrf.mxu2  ;;  %2304 = vmatmul.f32.gmra.mxu2 %v3090_v63  ;;  %465 = vst.msk [vmem:[#allocation2 + $0xe0] sm:$0xff] %vm436_vm0, %v3146_v54 }
 0x146   : > { %v3094_v49 = vpop.eup %3093  ;;  %3097 = vpow2.f32 %v1956_v41  ;;  %v1894_v11 = vmul.f32 1.442695, %v1816_v39  ;;  %v1704_v15 = vsub.f32 %v1107_v43, %v3833_v31  ;;  %v1268_v8 = vpop.f32.mrf.mxu3  ;;  %2369 = vmatmul.f32.gmra.mxu3 %v3092_v30  ;;  %466 = vst.msk [vmem:[#allocation2 + $0xe8] sm:$0xff] %vm436_vm0, %v3146_v54 }
 0x147   : > { %v1926_v3 = vmul.f32 1.442695, %v1832_v28  ;;  %v3096_v58 = vpop.eup %3095  ;;  %3099 = vpow2.f32 %v1988_v24  ;;  %v1720_v2 = vsub.f32 %v1268_v8, %v3836_v61  ;;  %v788_v55 = vpop.f32.mrf.mxu0  ;;  %2177 = vmatmul.f32.gmra.mxu0 %v3094_v49  ;;  %467 = vst.msk [vmem:[#allocation2 + $0xf0] sm:$0xff] %vm436_vm0, %v3146_v54  ;;  %v2010_v24 = vld [vmem:[#allocation2 + $0x80] sm:$0xff]  ;;  %v1995_v49 = vld [vmem:[#allocation2 + $0x8] sm:$0xff] }
 0x148   : > { %v949_v36 = vpop.f32.mrf.mxu1  ;;  %3101 = vpow2.f32 %v1894_v11  ;;  %v1784_v31 = vsub.f32 %v1704_v15, %v3681_v62  ;;  %v1673_v14 = vsub.f32 %v788_v55, %v1416_v60  ;;  %2242 = vmatmul.f32.gmra.mxu1 %v3096_v58  ;;  %468 = vst.msk [vmem:[#allocation2 + $0xf8] sm:$0xff] %vm436_vm0, %v3146_v54 }
 0x149   : > { %v1689_v25 = vsub.f32 %v949_v36, %v1496_v32  ;;  %3103 = vpow2.f32 %v1926_v3  ;;  %v1800_v50 = vsub.f32 %v1720_v2, %v3684_v4  ;;  %469 = vst.msk [vmem:[#allocation2 + $0x100] sm:$0xff] %vm436_vm0, %v3146_v54  ;;  %v2011_v32 = vld [vmem:[#allocation2 + $0x88] sm:$0xff]  ;;  %v1996_v36 = vld [vmem:[#allocation2 + $0x10] sm:$0xff] }
 0x14a   : > { %v1848_v61 = vmin.f32 %v1784_v31, 0.0  ;;  %v1753_v51 = vsub.f32 %v1673_v14, %v3117_v56  ;;  %470 = vst.msk [vmem:[#allocation2 + $0x108] sm:$0xff] %vm436_vm0, %v3146_v54  ;;  %v2012_v14 = vld [vmem:[#allocation2 + $0x90] sm:$0xff] }
 0x14b   : > { %v1769_v29 = vsub.f32 %v1689_v25, %v3118_v34  ;;  %v1864_v62 = vmin.f32 %v1800_v50, 0.0  ;;  %471 = vst.msk [vmem:[#allocation2 + $0x110] sm:$0xff] %vm436_vm0, %v3146_v54 }
 0x14c   : > { %v3098_v38 = vpop.eup %3097  ;;  %v1958_v53 = vmul.f32 1.442695, %v1848_v61  ;;  %v1817_v59 = vmin.f32 %v1753_v51, 0.0  ;;  %472 = vst.msk [vmem:[#allocation2 + $0x118] sm:$0xff] %vm436_vm0, %v3146_v54 }
 0x14d   : > { %v1833_v22 = vmin.f32 %v1769_v29, 0.0  ;;  %v3100_v4 = vpop.eup %3099  ;;  %v1990_v13 = vmul.f32 1.442695, %v1864_v62  ;;  %v1110_v1 = vpop.f32.mrf.mxu2  ;;  %2307 = vmatmul.f32.gmra.mxu2 %v3098_v38  ;;  %473 = vst.msk [vmem:[#allocation2 + $0x120] sm:$0xff] %vm436_vm0, %v3146_v54 }
 0x14e   : > { %v3102_v52 = vpop.eup %3101  ;;  %3105 = vpow2.f32 %v1958_v53  ;;  %v1896_v33 = vmul.f32 1.442695, %v1817_v59  ;;  %v1705_v44 = vsub.f32 %v1110_v1, %v3859_v0  ;;  %v1271_v6 = vpop.f32.mrf.mxu3  ;;  %2372 = vmatmul.f32.gmra.mxu3 %v3100_v4  ;;  %v3120_v0 = vld [vmem:[%s3382_s13 + $0x3] ss:$0 sm:$0xff]  ;;  %474 = vst.msk [vmem:[#allocation2 + $0x128] sm:$0xff] %vm436_vm0, %v3146_v54 }
 0x14f   : > { %v1928_v35 = vmul.f32 1.442695, %v1833_v22  ;;  %v3104_v47 = vpop.eup %3103  ;;  %3107 = vpow2.f32 %v1990_v13  ;;  %v1721_v48 = vsub.f32 %v1271_v6, %v1656_v10  ;;  %2180 = vmatmul.f32.gmra.mxu0 %v3102_v52  ;;  %475 = vst.msk [vmem:[#allocation2 + $0x130] sm:$0xff] %vm436_vm0, %v3146_v54  ;;  %v1997_v52 = vld [vmem:[#allocation2 + $0x18] sm:$0xff] }
 0x150   : > { %3109 = vpow2.f32 %v1896_v33  ;;  %v1785_v12 = vsub.f32 %v1705_v44, %v3119_v7  ;;  %2245 = vmatmul.f32.gmra.mxu1 %v3104_v47  ;;  %476 = vst.msk [vmem:[#allocation2 + $0x138] sm:$0xff] %vm436_vm0, %v3146_v54  ;;  %v2026_v3 = vld [vmem:[#allocation2 + $0x100] sm:$0xff]  ;;  %v2013_v33 = vld [vmem:[#allocation2 + $0x98] sm:$0xff] }
 0x151   : > { %3111 = vpow2.f32 %v1928_v35  ;;  %v1801_v37 = vsub.f32 %v1721_v48, %v3120_v0  ;;  %477 = vst.msk [vmem:[#allocation2 + $0x140] sm:$0xff] %vm436_vm0, %v3146_v54  ;;  %v2027_v50 = vld [vmem:[#allocation2 + $0x108] sm:$0xff] }
 0x152   : > { %v1849_v19 = vmin.f32 %v1785_v12, 0.0  ;;  %478 = vst.msk [vmem:[#allocation2 + $0x148] sm:$0xff] %vm436_vm0, %v3146_v54  ;;  %v2028_v6 = vld [vmem:[#allocation2 + $0x110] sm:$0xff] }
 0x153   : > { %v1865_v42 = vmin.f32 %v1801_v37, 0.0  ;;  %479 = vst.msk [vmem:[#allocation2 + $0x150] sm:$0xff] %vm436_vm0, %v3146_v54 }
 0x154   : > { %v3106_v27 = vpop.eup %3105  ;;  %v1960_v21 = vmul.f32 1.442695, %v1849_v19  ;;  %480 = vst.msk [vmem:[#allocation2 + $0x158] sm:$0xff] %vm436_vm0, %v3146_v54 }
 0x155   : > { %v3108_v16 = vpop.eup %3107  ;;  %v1992_v5 = vmul.f32 1.442695, %v1865_v42  ;;  %2310 = vmatmul.f32.gmra.mxu2 %v3106_v27  ;;  %481 = vst.msk [vmem:[#allocation2 + $0x160] sm:$0xff] %vm436_vm0, %v3146_v54  ;;  %v1998_v42 = vld [vmem:[#allocation2 + $0x20] sm:$0xff] }
 0x156   : > { %v3110_v9 = vpop.eup %3109  ;;  %3113 = vpow2.f32 %v1960_v21  ;;  %2375 = vmatmul.f32.gmra.mxu3 %v3108_v16  ;;  %482 = vst.msk [vmem:[#allocation2 + $0x168] sm:$0xff] %vm436_vm0, %v3146_v54  ;;  %v2014_v21 = vld [vmem:[#allocation2 + $0xa0] sm:$0xff] }
 0x157   : > { %v3112_v17 = vpop.eup %3111  ;;  %3115 = vpow2.f32 %v1992_v5  ;;  %2183 = vmatmul.f32.gmra.mxu0 %v3110_v9  ;;  %483 = vst.msk [vmem:[#allocation2 + $0x170] sm:$0xff] %vm436_vm0, %v3146_v54  ;;  %v2029_v5 = vld [vmem:[#allocation2 + $0x118] sm:$0xff] }
 0x158   : > { %2248 = vmatmul.f32.gmra.mxu1 %v3112_v17  ;;  %484 = vst.msk [vmem:[#allocation2 + $0x178] sm:$0xff] %vm436_vm0, %v3146_v54 }
 0x159   : > { %485 = vst.msk [vmem:[#allocation2 + $0x180] sm:$0xff] %vm436_vm0, %v3146_v54 }
 0x15a   : > { %v2139_v20 = vpop.f32.mrf.mxu0  ;;  %486 = vst.msk [vmem:[#allocation2 + $0x188] sm:$0xff] %vm436_vm0, %v3146_v54 }
 0x15b   : > { %v2382_v23 = vadd.f32 %v2139_v20, %v1994_v18  ;;  %v2204_v57 = vpop.f32.mrf.mxu1  ;;  %487 = vst.msk [vmem:[#allocation2 + $0x190] sm:$0xff] %vm436_vm0, %v3146_v54 }
 0x15c   : > { %v3114_v40 = vpop.eup %3113  ;;  %488 = vst.msk [vmem:[#allocation2 + $0x198] sm:$0xff] %vm436_vm0, %v3146_v54  ;;  %v2398_v11 = vadd.f32 %v2204_v57, %v2010_v24  ;;  %v2015_v24 = vld [vmem:[#allocation2 + $0xa8] sm:$0xff] }
 0x15d   : > { %v3116_v46 = vpop.eup %3115  ;;  %2313 = vmatmul.f32.gmra.mxu2 %v3114_v40  ;;  %2446 = vst.msk [vmem:[#allocation2] sm:$0xff] %vm436_vm0, %v2382_v23 }
 0x15e   : > { %2378 = vmatmul.f32.gmra.mxu3 %v3116_v46  ;;  %489 = vst.msk [vmem:[#allocation2 + $0x1a0] sm:$0xff] %vm436_vm0, %v3146_v54 }
 0x15f   : > { %490 = vst.msk [vmem:[#allocation2 + $0x1a8] sm:$0xff] %vm436_vm0, %v3146_v54 }
 0x160   : > { %491 = vst.msk [vmem:[#allocation2 + $0x1b0] sm:$0xff] %vm436_vm0, %v3146_v54  ;;  %v2042_v58 = vld [vmem:[#allocation2 + $0x180] sm:$0xff] }
 0x161   : > { %492 = vst.msk [vmem:[#allocation2 + $0x1b8] sm:$0xff] %vm436_vm0, %v3146_v54  ;;  %v2043_v4 = vld [vmem:[#allocation2 + $0x188] sm:$0xff] }
 0x162   : > { %493 = vst.msk [vmem:[#allocation2 + $0x1c0] sm:$0xff] %vm436_vm0, %v3146_v54  ;;  %v2044_v12 = vld [vmem:[#allocation2 + $0x190] sm:$0xff] }
 0x163   : > { %v2142_v45 = vpop.f32.mrf.mxu0  ;;  %494 = vst.msk [vmem:[#allocation2 + $0x1c8] sm:$0xff] %vm436_vm0, %v3146_v54 }
 0x164   : > { %v2513_v26 = vld [vmem:[#allocation2] sm:$0xff]  ;;  %v2207_v63 = vpop.f32.mrf.mxu1  ;;  %495 = vst.msk [vmem:[#allocation2 + $0x1d0] sm:$0xff] %vm436_vm0, %v3146_v54  ;;  %v2383_v8 = vadd.f32 %v2142_v45, %v1995_v49 }
 0x165   : > { %2577 = vst.msk [vmem:[%s3957_s16] sm:$0xff] %vm436_vm0, %v2513_v26  ;;  %v2399_v55 = vadd.f32 %v2207_v63, %v2011_v32  ;;  %v2030_v32 = vld [vmem:[#allocation2 + $0x120] sm:$0xff] }
 0x166   : > { %496 = vst.msk [vmem:[#allocation2 + $0x1d8] sm:$0xff] %vm436_vm0, %v3146_v54 }
 0x167   : > { %v2269_v41 = vpop.f32.mrf.mxu2  ;;  %497 = vst.msk [vmem:[#allocation2 + $0x1e0] sm:$0xff] %vm436_vm0, %v3146_v54 }
 0x168   : > { %v2334_v39 = vpop.f32.mrf.mxu3  ;;  %498 = vst.msk [vmem:[#allocation2 + $0x1e8] sm:$0xff] %vm436_vm0, %v3146_v54  ;;  %v2414_v31 = vadd.f32 %v2269_v41, %v2026_v3  ;;  %v2045_v41 = vld [vmem:[#allocation2 + $0x198] sm:$0xff] }
 0x169   : > { %499 = vst.msk [vmem:[#allocation2 + $0x1f0] sm:$0xff] %vm436_vm0, %v3146_v54  ;;  %v2430_v25 = vadd.f32 %v2334_v39, %v2042_v58 }
 0x16a   : > { %500 = vst.msk [vmem:[#allocation2 + $0x1f8] sm:$0xff] %vm436_vm0, %v3146_v54 }
 0x16b   : > { %2462 = vst.msk [vmem:[#allocation2 + $0x80] sm:$0xff] %vm436_vm0, %v2398_v11 }
 0x16c   : > { %v2145_v28 = vpop.f32.mrf.mxu0  ;;  %2447 = vst.msk [vmem:[#allocation2 + $0x8] sm:$0xff] %vm436_vm0, %v2383_v8  ;;  %v2046_v8 = vld [vmem:[#allocation2 + $0x1a0] sm:$0xff] }
 0x16d   : > { %v2210_v30 = vpop.f32.mrf.mxu1  ;;  %v2384_v56 = vadd.f32 %v2145_v28, %v1996_v36  ;;  %2463 = vst.msk [vmem:[#allocation2 + $0x88] sm:$0xff] %vm436_vm0, %v2399_v55  ;;  %v2000_v36 = vld [vmem:[#allocation2 + $0x30] sm:$0xff] }
 0x16e   : > { %v2400_v34 = vadd.f32 %v2210_v30, %v2012_v14  ;;  %2478 = vst.msk [vmem:[#allocation2 + $0x100] sm:$0xff] %vm436_vm0, %v2414_v31  ;;  %v1999_v30 = vld [vmem:[#allocation2 + $0x28] sm:$0xff]  ;;  %v2016_v14 = vld [vmem:[#allocation2 + $0xb0] sm:$0xff] }
 0x16f   : > { %2494 = vst.msk [vmem:[#allocation2 + $0x180] sm:$0xff] %vm436_vm0, %v2430_v25 }
 0x170   : > { %v2272_v60 = vpop.f32.mrf.mxu2  ;;  %2448 = vst.msk [vmem:[#allocation2 + $0x10] sm:$0xff] %vm436_vm0, %v2384_v56 }
 0x171   : > { %v2337_v43 = vpop.f32.mrf.mxu3  ;;  %v2415_v54 = vadd.f32 %v2272_v60, %v2027_v50  ;;  %2464 = vst.msk [vmem:[#allocation2 + $0x90] sm:$0xff] %vm436_vm0, %v2400_v34  ;;  %v2031_v50 = vld [vmem:[#allocation2 + $0x128] sm:$0xff] }
 0x172   : > { %v2529_v38 = vld [vmem:[#allocation2 + $0x80] sm:$0xff]  ;;  %v2431_v44 = vadd.f32 %v2337_v43, %v2043_v4  ;;  %v2047_v4 = vld [vmem:[#allocation2 + $0x1a8] sm:$0xff] }
 0x173   : > { %2479 = vst.msk [vmem:[#allocation2 + $0x108] sm:$0xff] %vm436_vm0, %v2415_v54  ;;  %v2514_v53 = vld [vmem:[#allocation2 + $0x8] sm:$0xff] }
 0x174   : > { %v2148_v15 = vpop.f32.mrf.mxu0  ;;  %2593 = vst.msk [vmem:[%s3957_s16 + $0x80] sm:$0xff] %vm436_vm0, %v2529_v38  ;;  %v2530_v22 = vld [vmem:[#allocation2 + $0x88] sm:$0xff] }
 0x175   : > { %v2213_v2 = vpop.f32.mrf.mxu1  ;;  %2578 = vst.msk [vmem:[%s3957_s16 + $0x8] sm:$0xff] %vm436_vm0, %v2514_v53  ;;  %v2545_v1 = vld [vmem:[#allocation2 + $0x100] sm:$0xff]  ;;  %v2385_v7 = vadd.f32 %v2148_v15, %v1997_v52  ;;  %v2001_v52 = vld [vmem:[#allocation2 + $0x38] sm:$0xff] }
 0x176   : > { %2594 = vst.msk [vmem:[%s3957_s16 + $0x88] sm:$0xff] %vm436_vm0, %v2530_v22  ;;  %v2561_v10 = vld [vmem:[#allocation2 + $0x180] sm:$0xff]  ;;  %v2401_v19 = vadd.f32 %v2213_v2, %v2013_v33  ;;  %v2017_v33 = vld [vmem:[#allocation2 + $0xb8] sm:$0xff] }
 0x177   : > { %2609 = vst.msk [vmem:[%s3957_s16 + $0x100] sm:$0xff] %vm436_vm0, %v2545_v1  ;;  %v2515_v35 = vld [vmem:[#allocation2 + $0x10] sm:$0xff] }
 0x178   : > { %v2275_v61 = vpop.f32.mrf.mxu2  ;;  %2625 = vst.msk [vmem:[%s3957_s16 + $0x180] sm:$0xff] %vm436_vm0, %v2561_v10  ;;  %v2531_v48 = vld [vmem:[#allocation2 + $0x90] sm:$0xff] }
 0x179   : > { %v2340_v51 = vpop.f32.mrf.mxu3  ;;  %2579 = vst.msk [vmem:[%s3957_s16 + $0x10] sm:$0xff] %vm436_vm0, %v2515_v35  ;;  %v2416_v27 = vadd.f32 %v2275_v61, %v2028_v6  ;;  %v2032_v6 = vld [vmem:[#allocation2 + $0x130] sm:$0xff] }
 0x17a   : > { %2595 = vst.msk [vmem:[%s3957_s16 + $0x90] sm:$0xff] %vm436_vm0, %v2531_v48  ;;  %v2546_v37 = vld [vmem:[#allocation2 + $0x108] sm:$0xff]  ;;  %v2432_v16 = vadd.f32 %v2340_v51, %v2044_v12  ;;  %v2048_v12 = vld [vmem:[#allocation2 + $0x1b0] sm:$0xff] }
 0x17b   : > { %2610 = vst.msk [vmem:[%s3957_s16 + $0x108] sm:$0xff] %vm436_vm0, %v2546_v37 }
 0x17c   : > { %v2151_v29 = vpop.f32.mrf.mxu0  ;;  %2495 = vst.msk [vmem:[#allocation2 + $0x188] sm:$0xff] %vm436_vm0, %v2431_v44 }
 0x17d   : > { %v2216_v62 = vpop.f32.mrf.mxu1  ;;  %2449 = vst.msk [vmem:[#allocation2 + $0x18] sm:$0xff] %vm436_vm0, %v2385_v7  ;;  %v2386_v17 = vadd.f32 %v2151_v29, %v1998_v42  ;;  %v2002_v42 = vld [vmem:[#allocation2 + $0x40] sm:$0xff] }
 0x17e   : > { %2465 = vst.msk [vmem:[#allocation2 + $0x98] sm:$0xff] %vm436_vm0, %v2401_v19  ;;  %v2402_v20 = vadd.f32 %v2216_v62, %v2014_v21  ;;  %v2018_v21 = vld [vmem:[#allocation2 + $0xc0] sm:$0xff] }
 0x17f   : > { %2480 = vst.msk [vmem:[#allocation2 + $0x110] sm:$0xff] %vm436_vm0, %v2416_v27 }
 0x180   : > { %v2278_v59 = vpop.f32.mrf.mxu2  ;;  %2496 = vst.msk [vmem:[#allocation2 + $0x190] sm:$0xff] %vm436_vm0, %v2432_v16 }
 0x181   : > { %v2343_v13 = vpop.f32.mrf.mxu3  ;;  %v2417_v40 = vadd.f32 %v2278_v59, %v2029_v5  ;;  %2450 = vst.msk [vmem:[#allocation2 + $0x20] sm:$0xff] %vm436_vm0, %v2386_v17  ;;  %v2033_v5 = vld [vmem:[#allocation2 + $0x138] sm:$0xff] }
 0x182   : > { %2466 = vst.msk [vmem:[#allocation2 + $0xa0] sm:$0xff] %vm436_vm0, %v2402_v20  ;;  %v2433_v49 = vadd.f32 %v2343_v13, %v2045_v41  ;;  %v2049_v41 = vld [vmem:[#allocation2 + $0x1b8] sm:$0xff] }
 0x183   : > { %v2562_v46 = vld [vmem:[#allocation2 + $0x188] sm:$0xff]  ;;  %2481 = vst.msk [vmem:[#allocation2 + $0x118] sm:$0xff] %vm436_vm0, %v2417_v40 }
 0x184   : > { %v2154_v47 = vpop.f32.mrf.mxu0  ;;  %2626 = vst.msk [vmem:[%s3957_s16 + $0x188] sm:$0xff] %vm436_vm0, %v2562_v46  ;;  %v2516_v45 = vld [vmem:[#allocation2 + $0x18] sm:$0xff] }
 0x185   : > { %v2219_v0 = vpop.f32.mrf.mxu1  ;;  %2580 = vst.msk [vmem:[%s3957_s16 + $0x18] sm:$0xff] %vm436_vm0, %v2516_v45  ;;  %v2532_v63 = vld [vmem:[#allocation2 + $0x98] sm:$0xff]  ;;  %v2387_v15 = vadd.f32 %v2154_v47, %v1999_v30  ;;  %v2003_v30 = vld [vmem:[#allocation2 + $0x48] sm:$0xff] }
 0x186   : > { %2596 = vst.msk [vmem:[%s3957_s16 + $0x98] sm:$0xff] %vm436_vm0, %v2532_v63  ;;  %v2547_v28 = vld [vmem:[#allocation2 + $0x110] sm:$0xff]  ;;  %v2403_v55 = vadd.f32 %v2219_v0, %v2015_v24  ;;  %v2019_v24 = vld [vmem:[#allocation2 + $0xc8] sm:$0xff] }
 0x187   : > { %2611 = vst.msk [vmem:[%s3957_s16 + $0x110] sm:$0xff] %vm436_vm0, %v2547_v28  ;;  %v2563_v60 = vld [vmem:[#allocation2 + $0x190] sm:$0xff] }
 0x188   : > { %v2281_v9 = vpop.f32.mrf.mxu2  ;;  %2627 = vst.msk [vmem:[%s3957_s16 + $0x190] sm:$0xff] %vm436_vm0, %v2563_v60  ;;  %v2517_v43 = vld [vmem:[#allocation2 + $0x20] sm:$0xff] }
 0x189   : > { %v2346_v18 = vpop.f32.mrf.mxu3  ;;  %2581 = vst.msk [vmem:[%s3957_s16 + $0x20] sm:$0xff] %vm436_vm0, %v2517_v43  ;;  %v2533_v3 = vld [vmem:[#allocation2 + $0xa0] sm:$0xff]  ;;  %v2418_v31 = vadd.f32 %v2281_v9, %v2030_v32 }
 0x18a   : > { %2597 = vst.msk [vmem:[%s3957_s16 + $0xa0] sm:$0xff] %vm436_vm0, %v2533_v3  ;;  %v2548_v2 = vld [vmem:[#allocation2 + $0x118] sm:$0xff]  ;;  %v2434_v25 = vadd.f32 %v2346_v18, %v2046_v8  ;;  %v2034_v32 = vld [vmem:[#allocation2 + $0x140] sm:$0xff] }
 0x18b   : > { %2612 = vst.msk [vmem:[%s3957_s16 + $0x118] sm:$0xff] %vm436_vm0, %v2548_v2  ;;  %v2004_v2 = vld [vmem:[#allocation2 + $0x50] sm:$0xff] }
 0x18c   : > { %v2157_v23 = vpop.f32.mrf.mxu0  ;;  %2497 = vst.msk [vmem:[#allocation2 + $0x198] sm:$0xff] %vm436_vm0, %v2433_v49 }
 0x18d   : > { %v2222_v57 = vpop.f32.mrf.mxu1  ;;  %2451 = vst.msk [vmem:[#allocation2 + $0x28] sm:$0xff] %vm436_vm0, %v2387_v15  ;;  %v2388_v56 = vadd.f32 %v2157_v23, %v2000_v36  ;;  %v2050_v15 = vld [vmem:[#allocation2 + $0x1c0] sm:$0xff]  ;;  %v2020_v36 = vld [vmem:[#allocation2 + $0xd0] sm:$0xff] }
 0x18e   : > { %2467 = vst.msk [vmem:[#allocation2 + $0xa8] sm:$0xff] %vm436_vm0, %v2403_v55  ;;  %v2404_v34 = vadd.f32 %v2222_v57, %v2016_v14  ;;  %v2035_v14 = vld [vmem:[#allocation2 + $0x148] sm:$0xff] }
 0x18f   : > { %2482 = vst.msk [vmem:[#allocation2 + $0x120] sm:$0xff] %vm436_vm0, %v2418_v31 }
 0x190   : > { %v2284_v26 = vpop.f32.mrf.mxu2  ;;  %2498 = vst.msk [vmem:[#allocation2 + $0x1a0] sm:$0xff] %vm436_vm0, %v2434_v25 }
 0x191   : > { %v2349_v39 = vpop.f32.mrf.mxu3  ;;  %v2419_v54 = vadd.f32 %v2284_v26, %v2031_v50  ;;  %2452 = vst.msk [vmem:[#allocation2 + $0x30] sm:$0xff] %vm436_vm0, %v2388_v56 }
 0x192   : > { %2468 = vst.msk [vmem:[#allocation2 + $0xb0] sm:$0xff] %vm436_vm0, %v2404_v34  ;;  %v2435_v44 = vadd.f32 %v2349_v39, %v2047_v4 }
 0x193   : > { %v2564_v38 = vld [vmem:[#allocation2 + $0x198] sm:$0xff]  ;;  %2483 = vst.msk [vmem:[#allocation2 + $0x128] sm:$0xff] %vm436_vm0, %v2419_v54 }
 0x194   : > { %v2160_v11 = vpop.f32.mrf.mxu0  ;;  %2628 = vst.msk [vmem:[%s3957_s16 + $0x198] sm:$0xff] %vm436_vm0, %v2564_v38  ;;  %v2518_v53 = vld [vmem:[#allocation2 + $0x28] sm:$0xff] }
 0x195   : > { %v2225_v58 = vpop.f32.mrf.mxu1  ;;  %2582 = vst.msk [vmem:[%s3957_s16 + $0x28] sm:$0xff] %vm436_vm0, %v2518_v53  ;;  %v2534_v22 = vld [vmem:[#allocation2 + $0xa8] sm:$0xff]  ;;  %v2389_v7 = vadd.f32 %v2160_v11, %v2001_v52 }
 0x196   : > { %2598 = vst.msk [vmem:[%s3957_s16 + $0xa8] sm:$0xff] %vm436_vm0, %v2534_v22  ;;  %v2549_v1 = vld [vmem:[#allocation2 + $0x120] sm:$0xff]  ;;  %v2405_v19 = vadd.f32 %v2225_v58, %v2017_v33 }
 0x197   : > { %2613 = vst.msk [vmem:[%s3957_s16 + $0x120] sm:$0xff] %vm436_vm0, %v2549_v1  ;;  %v2565_v10 = vld [vmem:[#allocation2 + $0x1a0] sm:$0xff] }
 0x198   : > { %v2287_v61 = vpop.f32.mrf.mxu2  ;;  %2629 = vst.msk [vmem:[%s3957_s16 + $0x1a0] sm:$0xff] %vm436_vm0, %v2565_v10  ;;  %v2519_v35 = vld [vmem:[#allocation2 + $0x30] sm:$0xff]  ;;  %v2021_v10 = vld [vmem:[#allocation2 + $0xd8] sm:$0xff] }
 0x199   : > { %v2352_v51 = vpop.f32.mrf.mxu3  ;;  %2583 = vst.msk [vmem:[%s3957_s16 + $0x30] sm:$0xff] %vm436_vm0, %v2519_v35  ;;  %v2535_v48 = vld [vmem:[#allocation2 + $0xb0] sm:$0xff]  ;;  %v2420_v27 = vadd.f32 %v2287_v61, %v2032_v6 }
 0x19a   : > { %2599 = vst.msk [vmem:[%s3957_s16 + $0xb0] sm:$0xff] %vm436_vm0, %v2535_v48  ;;  %v2550_v37 = vld [vmem:[#allocation2 + $0x128] sm:$0xff]  ;;  %v2436_v16 = vadd.f32 %v2352_v51, %v2048_v12  ;;  %v2036_v6 = vld [vmem:[#allocation2 + $0x150] sm:$0xff] }
 0x19b   : > { %2614 = vst.msk [vmem:[%s3957_s16 + $0x128] sm:$0xff] %vm436_vm0, %v2550_v37  ;;  %v2006_v37 = vld [vmem:[#allocation2 + $0x60] sm:$0xff] }
 0x19c   : > { %v2163_v29 = vpop.f32.mrf.mxu0  ;;  %2499 = vst.msk [vmem:[#allocation2 + $0x1a8] sm:$0xff] %vm436_vm0, %v2435_v44 }
 0x19d   : > { %v2228_v62 = vpop.f32.mrf.mxu1  ;;  %2453 = vst.msk [vmem:[#allocation2 + $0x38] sm:$0xff] %vm436_vm0, %v2389_v7  ;;  %v2390_v17 = vadd.f32 %v2163_v29, %v2002_v42  ;;  %v2052_v7 = vld [vmem:[#allocation2 + $0x1d0] sm:$0xff]  ;;  %v2022_v42 = vld [vmem:[#allocation2 + $0xe0] sm:$0xff] }
 0x19e   : > { %2469 = vst.msk [vmem:[#allocation2 + $0xb8] sm:$0xff] %vm436_vm0, %v2405_v19  ;;  %v2406_v20 = vadd.f32 %v2228_v62, %v2018_v21  ;;  %v2037_v21 = vld [vmem:[#allocation2 + $0x158] sm:$0xff] }
 0x19f   : > { %2484 = vst.msk [vmem:[#allocation2 + $0x130] sm:$0xff] %vm436_vm0, %v2420_v27 }
 0x1a0   : > { %v2290_v59 = vpop.f32.mrf.mxu2  ;;  %2500 = vst.msk [vmem:[#allocation2 + $0x1b0] sm:$0xff] %vm436_vm0, %v2436_v16 }
 0x1a1   : > { %v2355_v13 = vpop.f32.mrf.mxu3  ;;  %v2421_v40 = vadd.f32 %v2290_v59, %v2033_v5  ;;  %2454 = vst.msk [vmem:[#allocation2 + $0x40] sm:$0xff] %vm436_vm0, %v2390_v17  ;;  %v2051_v59 = vld [vmem:[#allocation2 + $0x1c8] sm:$0xff] }
 0x1a2   : > { %2470 = vst.msk [vmem:[#allocation2 + $0xc0] sm:$0xff] %vm436_vm0, %v2406_v20  ;;  %v2437_v49 = vadd.f32 %v2355_v13, %v2049_v41  ;;  %v2005_v13 = vld [vmem:[#allocation2 + $0x58] sm:$0xff] }
 0x1a3   : > { %v2566_v57 = vld [vmem:[#allocation2 + $0x1a8] sm:$0xff]  ;;  %2485 = vst.msk [vmem:[#allocation2 + $0x138] sm:$0xff] %vm436_vm0, %v2421_v40 }
 0x1a4   : > { %v2166_v47 = vpop.f32.mrf.mxu0  ;;  %2630 = vst.msk [vmem:[%s3957_s16 + $0x1a8] sm:$0xff] %vm436_vm0, %v2566_v57  ;;  %v2520_v45 = vld [vmem:[#allocation2 + $0x38] sm:$0xff] }
 0x1a5   : > { %v2231_v0 = vpop.f32.mrf.mxu1  ;;  %2584 = vst.msk [vmem:[%s3957_s16 + $0x38] sm:$0xff] %vm436_vm0, %v2520_v45  ;;  %v2536_v63 = vld [vmem:[#allocation2 + $0xb8] sm:$0xff]  ;;  %v2391_v3 = vadd.f32 %v2166_v47, %v2003_v30 }
 0x1a6   : > { %2600 = vst.msk [vmem:[%s3957_s16 + $0xb8] sm:$0xff] %vm436_vm0, %v2536_v63  ;;  %v2551_v28 = vld [vmem:[#allocation2 + $0x130] sm:$0xff]  ;;  %v2407_v58 = vadd.f32 %v2231_v0, %v2019_v24  ;;  %v2053_v45 = vld [vmem:[#allocation2 + $0x1d8] sm:$0xff]  ;;  %v2007_v63 = vld [vmem:[#allocation2 + $0x68] sm:$0xff] }
 0x1a7   : > { %2615 = vst.msk [vmem:[%s3957_s16 + $0x130] sm:$0xff] %vm436_vm0, %v2551_v28  ;;  %v2567_v60 = vld [vmem:[#allocation2 + $0x1b0] sm:$0xff]  ;;  %v2023_v28 = vld [vmem:[#allocation2 + $0xe8] sm:$0xff] }
 0x1a8   : > { %v2293_v9 = vpop.f32.mrf.mxu2  ;;  %2631 = vst.msk [vmem:[%s3957_s16 + $0x1b0] sm:$0xff] %vm436_vm0, %v2567_v60  ;;  %v2521_v43 = vld [vmem:[#allocation2 + $0x40] sm:$0xff] }
 0x1a9   : > { %v2358_v18 = vpop.f32.mrf.mxu3  ;;  %2585 = vst.msk [vmem:[%s3957_s16 + $0x40] sm:$0xff] %vm436_vm0, %v2521_v43  ;;  %v2537_v11 = vld [vmem:[#allocation2 + $0xc0] sm:$0xff]  ;;  %v2422_v55 = vadd.f32 %v2293_v9, %v2034_v32 }
 0x1aa   : > { %2601 = vst.msk [vmem:[%s3957_s16 + $0xc0] sm:$0xff] %vm436_vm0, %v2537_v11  ;;  %v2552_v8 = vld [vmem:[#allocation2 + $0x138] sm:$0xff]  ;;  %v2438_v31 = vadd.f32 %v2358_v18, %v2050_v15  ;;  %v2038_v43 = vld [vmem:[#allocation2 + $0x160] sm:$0xff] }
 0x1ab   : > { %2616 = vst.msk [vmem:[%s3957_s16 + $0x138] sm:$0xff] %vm436_vm0, %v2552_v8  ;;  %v2054_v11 = vld [vmem:[#allocation2 + $0x1e0] sm:$0xff]  ;;  %v2008_v8 = vld [vmem:[#allocation2 + $0x70] sm:$0xff] }
 0x1ac   : > { %v2169_v23 = vpop.f32.mrf.mxu0  ;;  %2501 = vst.msk [vmem:[#allocation2 + $0x1b8] sm:$0xff] %vm436_vm0, %v2437_v49 }
 0x1ad   : > { %v2234_v46 = vpop.f32.mrf.mxu1  ;;  %2455 = vst.msk [vmem:[#allocation2 + $0x48] sm:$0xff] %vm436_vm0, %v2391_v3  ;;  %v2392_v61 = vadd.f32 %v2169_v23, %v2004_v2 }
 0x1ae   : > { %2471 = vst.msk [vmem:[#allocation2 + $0xc8] sm:$0xff] %vm436_vm0, %v2407_v58  ;;  %v2408_v34 = vadd.f32 %v2234_v46, %v2020_v36 }
 0x1af   : > { %2486 = vst.msk [vmem:[#allocation2 + $0x140] sm:$0xff] %vm436_vm0, %v2422_v55  ;;  %v2024_v55 = vld [vmem:[#allocation2 + $0xf0] sm:$0xff] }
 0x1b0   : > { %v2296_v26 = vpop.f32.mrf.mxu2  ;;  %2502 = vst.msk [vmem:[#allocation2 + $0x1c0] sm:$0xff] %vm436_vm0, %v2438_v31 }
 0x1b1   : > { %v2361_v39 = vpop.f32.mrf.mxu3  ;;  %v2423_v54 = vadd.f32 %v2296_v26, %v2035_v14  ;;  %2456 = vst.msk [vmem:[#allocation2 + $0x50] sm:$0xff] %vm436_vm0, %v2392_v61  ;;  %v2039_v14 = vld [vmem:[#allocation2 + $0x168] sm:$0xff] }
 0x1b2   : > { %2472 = vst.msk [vmem:[#allocation2 + $0xd0] sm:$0xff] %vm436_vm0, %v2408_v34  ;;  %v2439_v44 = vadd.f32 %v2361_v39, %v2051_v59 }
 0x1b3   : > { %v2568_v29 = vld [vmem:[#allocation2 + $0x1b8] sm:$0xff]  ;;  %2487 = vst.msk [vmem:[#allocation2 + $0x148] sm:$0xff] %vm436_vm0, %v2423_v54 }
 0x1b4   : > { %v2172_v25 = vpop.f32.mrf.mxu0  ;;  %2632 = vst.msk [vmem:[%s3957_s16 + $0x1b8] sm:$0xff] %vm436_vm0, %v2568_v29  ;;  %v2522_v62 = vld [vmem:[#allocation2 + $0x48] sm:$0xff] }
 0x1b5   : > { %v2237_v56 = vpop.f32.mrf.mxu1  ;;  %2586 = vst.msk [vmem:[%s3957_s16 + $0x48] sm:$0xff] %vm436_vm0, %v2522_v62  ;;  %v2538_v53 = vld [vmem:[#allocation2 + $0xc8] sm:$0xff]  ;;  %v2393_v48 = vadd.f32 %v2172_v25, %v2005_v13 }
 0x1b6   : > { %2602 = vst.msk [vmem:[%s3957_s16 + $0xc8] sm:$0xff] %vm436_vm0, %v2538_v53  ;;  %v2553_v4 = vld [vmem:[#allocation2 + $0x140] sm:$0xff]  ;;  %v2409_v0 = vadd.f32 %v2237_v56, %v2021_v10  ;;  %v2055_v62 = vld [vmem:[#allocation2 + $0x1e8] sm:$0xff]  ;;  %v2009_v53 = vld [vmem:[#allocation2 + $0x78] sm:$0xff] }
 0x1b7   : > { %2617 = vst.msk [vmem:[%s3957_s16 + $0x140] sm:$0xff] %vm436_vm0, %v2553_v4  ;;  %v2569_v52 = vld [vmem:[#allocation2 + $0x1c0] sm:$0xff]  ;;  %v2025_v4 = vld [vmem:[#allocation2 + $0xf8] sm:$0xff]  ;;  %v2040_v10 = vld [vmem:[#allocation2 + $0x170] sm:$0xff] }
 0x1b8   : > { %v2299_v50 = vpop.f32.mrf.mxu2  ;;  %2633 = vst.msk [vmem:[%s3957_s16 + $0x1c0] sm:$0xff] %vm436_vm0, %v2569_v52  ;;  %v2523_v35 = vld [vmem:[#allocation2 + $0x50] sm:$0xff] }
 0x1b9   : > { %v2364_v51 = vpop.f32.mrf.mxu3  ;;  %2587 = vst.msk [vmem:[%s3957_s16 + $0x50] sm:$0xff] %vm436_vm0, %v2523_v35  ;;  %v2539_v47 = vld [vmem:[#allocation2 + $0xd0] sm:$0xff]  ;;  %v2424_v19 = vadd.f32 %v2299_v50, %v2036_v6 }
 0x1ba   : > { %2603 = vst.msk [vmem:[%s3957_s16 + $0xd0] sm:$0xff] %vm436_vm0, %v2539_v47  ;;  %v2554_v12 = vld [vmem:[#allocation2 + $0x148] sm:$0xff]  ;;  %v2440_v27 = vadd.f32 %v2364_v51, %v2052_v7 }
 0x1bb   : > { %2618 = vst.msk [vmem:[%s3957_s16 + $0x148] sm:$0xff] %vm436_vm0, %v2554_v12 }
 0x1bc   : > { %v2175_v1 = vpop.f32.mrf.mxu0  ;;  %2503 = vst.msk [vmem:[#allocation2 + $0x1c8] sm:$0xff] %vm436_vm0, %v2439_v44  ;;  %v2056_v44 = vld [vmem:[#allocation2 + $0x1f0] sm:$0xff] }
 0x1bd   : > { %v2240_v33 = vpop.f32.mrf.mxu1  ;;  %2457 = vst.msk [vmem:[#allocation2 + $0x58] sm:$0xff] %vm436_vm0, %v2393_v48  ;;  %v2394_v5 = vadd.f32 %v2175_v1, %v2006_v37  ;;  %v2041_v48 = vld [vmem:[#allocation2 + $0x178] sm:$0xff] }
 0x1be   : > { %2473 = vst.msk [vmem:[#allocation2 + $0xd8] sm:$0xff] %vm436_vm0, %v2409_v0  ;;  %v2410_v17 = vadd.f32 %v2240_v33, %v2022_v42  ;;  %v2057_v0 = vld [vmem:[#allocation2 + $0x1f8] sm:$0xff] }
 0x1bf   : > { %2488 = vst.msk [vmem:[#allocation2 + $0x150] sm:$0xff] %vm436_vm0, %v2424_v19 }
 0x1c0   : > { %v2302_v38 = vpop.f32.mrf.mxu2  ;;  %2504 = vst.msk [vmem:[#allocation2 + $0x1d0] sm:$0xff] %vm436_vm0, %v2440_v27 }
 0x1c1   : > { %v2367_v22 = vpop.f32.mrf.mxu3  ;;  %v2425_v18 = vadd.f32 %v2302_v38, %v2037_v21  ;;  %2458 = vst.msk [vmem:[#allocation2 + $0x60] sm:$0xff] %vm436_vm0, %v2394_v5 }
 0x1c2   : > { %2474 = vst.msk [vmem:[#allocation2 + $0xe0] sm:$0xff] %vm436_vm0, %v2410_v17  ;;  %v2441_v24 = vadd.f32 %v2367_v22, %v2053_v45 }
 0x1c3   : > { %v2570_v23 = vld [vmem:[#allocation2 + $0x1c8] sm:$0xff]  ;;  %2489 = vst.msk [vmem:[#allocation2 + $0x158] sm:$0xff] %vm436_vm0, %v2425_v18 }
 0x1c4   : > { %v2178_v20 = vpop.f32.mrf.mxu0  ;;  %2634 = vst.msk [vmem:[%s3957_s16 + $0x1c8] sm:$0xff] %vm436_vm0, %v2570_v23  ;;  %v2524_v57 = vld [vmem:[#allocation2 + $0x58] sm:$0xff] }
 0x1c5   : > { %v2243_v40 = vpop.f32.mrf.mxu1  ;;  %2588 = vst.msk [vmem:[%s3957_s16 + $0x58] sm:$0xff] %vm436_vm0, %v2524_v57  ;;  %v2540_v46 = vld [vmem:[#allocation2 + $0xd8] sm:$0xff]  ;;  %v2395_v32 = vadd.f32 %v2178_v20, %v2007_v63 }
 0x1c6   : > { %2604 = vst.msk [vmem:[%s3957_s16 + $0xd8] sm:$0xff] %vm436_vm0, %v2540_v46  ;;  %v2555_v26 = vld [vmem:[#allocation2 + $0x150] sm:$0xff]  ;;  %v2411_v15 = vadd.f32 %v2243_v40, %v2023_v28 }
 0x1c7   : > { %2619 = vst.msk [vmem:[%s3957_s16 + $0x150] sm:$0xff] %vm436_vm0, %v2555_v26  ;;  %v2571_v39 = vld [vmem:[#allocation2 + $0x1d0] sm:$0xff] }
 0x1c8   : > { %v2305_v16 = vpop.f32.mrf.mxu2  ;;  %2635 = vst.msk [vmem:[%s3957_s16 + $0x1d0] sm:$0xff] %vm436_vm0, %v2571_v39  ;;  %v2525_v60 = vld [vmem:[#allocation2 + $0x60] sm:$0xff] }
 0x1c9   : > { %v2370_v9 = vpop.f32.mrf.mxu3  ;;  %2589 = vst.msk [vmem:[%s3957_s16 + $0x60] sm:$0xff] %vm436_vm0, %v2525_v60  ;;  %v2541_v49 = vld [vmem:[#allocation2 + $0xe0] sm:$0xff]  ;;  %v2426_v2 = vadd.f32 %v2305_v16, %v2038_v43 }
 0x1ca   : > { %2605 = vst.msk [vmem:[%s3957_s16 + $0xe0] sm:$0xff] %vm436_vm0, %v2541_v49  ;;  %v2556_v3 = vld [vmem:[#allocation2 + $0x158] sm:$0xff]  ;;  %v2442_v31 = vadd.f32 %v2370_v9, %v2054_v11 }
 0x1cb   : > { %2620 = vst.msk [vmem:[%s3957_s16 + $0x158] sm:$0xff] %vm436_vm0, %v2556_v3 }
 0x1cc   : > { %v2181_v58 = vpop.f32.mrf.mxu0  ;;  %2505 = vst.msk [vmem:[#allocation2 + $0x1d8] sm:$0xff] %vm436_vm0, %v2441_v24 }
 0x1cd   : > { %v2246_v36 = vpop.f32.mrf.mxu1  ;;  %2459 = vst.msk [vmem:[#allocation2 + $0x68] sm:$0xff] %vm436_vm0, %v2395_v32  ;;  %v2396_v25 = vadd.f32 %v2181_v58, %v2008_v8 }
 0x1ce   : > { %2475 = vst.msk [vmem:[#allocation2 + $0xe8] sm:$0xff] %vm436_vm0, %v2411_v15  ;;  %v2412_v50 = vadd.f32 %v2246_v36, %v2024_v55 }
 0x1cf   : > { %2490 = vst.msk [vmem:[#allocation2 + $0x160] sm:$0xff] %vm436_vm0, %v2426_v2 }
 0x1d0   : > { %v2308_v41 = vpop.f32.mrf.mxu2  ;;  %2506 = vst.msk [vmem:[#allocation2 + $0x1e0] sm:$0xff] %vm436_vm0, %v2442_v31 }
 0x1d1   : > { %v2373_v30 = vpop.f32.mrf.mxu3  ;;  %v2427_v61 = vadd.f32 %v2308_v41, %v2039_v14  ;;  %2460 = vst.msk [vmem:[#allocation2 + $0x70] sm:$0xff] %vm436_vm0, %v2396_v25 }
 0x1d2   : > { %2476 = vst.msk [vmem:[#allocation2 + $0xf0] sm:$0xff] %vm436_vm0, %v2412_v50  ;;  %v2443_v52 = vadd.f32 %v2373_v30, %v2055_v62 }
 0x1d3   : > { %v2572_v34 = vld [vmem:[#allocation2 + $0x1d8] sm:$0xff]  ;;  %2491 = vst.msk [vmem:[#allocation2 + $0x168] sm:$0xff] %vm436_vm0, %v2427_v61 }
 0x1d4   : > { %2636 = vst.msk [vmem:[%s3957_s16 + $0x1d8] sm:$0xff] %vm436_vm0, %v2572_v34  ;;  %v2526_v54 = vld [vmem:[#allocation2 + $0x68] sm:$0xff]  ;;  %v2184_v59 = vpop.f32.mrf.mxu0 }
 0x1d5   : > { %2590 = vst.msk [vmem:[%s3957_s16 + $0x68] sm:$0xff] %vm436_vm0, %v2526_v54  ;;  %v2542_v29 = vld [vmem:[#allocation2 + $0xe8] sm:$0xff]  ;;  %v2249_v13 = vpop.f32.mrf.mxu1  ;;  %v2397_v35 = vadd.f32 %v2184_v59, %v2009_v53 }
 0x1d6   : > { %2606 = vst.msk [vmem:[%s3957_s16 + $0xe8] sm:$0xff] %vm436_vm0, %v2542_v29  ;;  %v2557_v38 = vld [vmem:[#allocation2 + $0x160] sm:$0xff]  ;;  %v2413_v47 = vadd.f32 %v2249_v13, %v2025_v4 }
 0x1d7   : > { %2621 = vst.msk [vmem:[%s3957_s16 + $0x160] sm:$0xff] %vm436_vm0, %v2557_v38  ;;  %v2573_v22 = vld [vmem:[#allocation2 + $0x1e0] sm:$0xff] }
 0x1d8   : > { %v2311_v56 = vpop.f32.mrf.mxu2  ;;  %2637 = vst.msk [vmem:[%s3957_s16 + $0x1e0] sm:$0xff] %vm436_vm0, %v2573_v22  ;;  %v2527_v1 = vld [vmem:[#allocation2 + $0x70] sm:$0xff] }
 0x1d9   : > { %v2376_v51 = vpop.f32.mrf.mxu3  ;;  %2591 = vst.msk [vmem:[%s3957_s16 + $0x70] sm:$0xff] %vm436_vm0, %v2527_v1  ;;  %v2543_v33 = vld [vmem:[#allocation2 + $0xf0] sm:$0xff]  ;;  %v2428_v12 = vadd.f32 %v2311_v56, %v2040_v10 }
 0x1da   : > { %2607 = vst.msk [vmem:[%s3957_s16 + $0xf0] sm:$0xff] %vm436_vm0, %v2543_v33  ;;  %v2558_v6 = vld [vmem:[#allocation2 + $0x168] sm:$0xff]  ;;  %v2444_v19 = vadd.f32 %v2376_v51, %v2056_v44 }
 0x1db   : > { %2622 = vst.msk [vmem:[%s3957_s16 + $0x168] sm:$0xff] %vm436_vm0, %v2558_v6 }
 0x1dc   : > { %2507 = vst.msk [vmem:[#allocation2 + $0x1e8] sm:$0xff] %vm436_vm0, %v2443_v52 }
 0x1dd   : > { %2461 = vst.msk [vmem:[#allocation2 + $0x78] sm:$0xff] %vm436_vm0, %v2397_v35 }
 0x1de   : > { %2477 = vst.msk [vmem:[#allocation2 + $0xf8] sm:$0xff] %vm436_vm0, %v2413_v47 }
 0x1df   : > { %2492 = vst.msk [vmem:[#allocation2 + $0x170] sm:$0xff] %vm436_vm0, %v2428_v12 }
 0x1e0   : > { %v2314_v7 = vpop.f32.mrf.mxu2  ;;  %2508 = vst.msk [vmem:[#allocation2 + $0x1f0] sm:$0xff] %vm436_vm0, %v2444_v19 }
 0x1e1   : > { %v2379_v37 = vpop.f32.mrf.mxu3  ;;  %v2429_v42 = vadd.f32 %v2314_v7, %v2041_v48 }
 0x1e2   : > { %v2445_v27 = vadd.f32 %v2379_v37, %v2057_v0 }
 0x1e3   : > { %2493 = vst.msk [vmem:[#allocation2 + $0x178] sm:$0xff] %vm436_vm0, %v2429_v42  ;;  %v2574_v21 = vld [vmem:[#allocation2 + $0x1e8] sm:$0xff] }
 0x1e4   : > { %2509 = vst.msk [vmem:[#allocation2 + $0x1f8] sm:$0xff] %vm436_vm0, %v2445_v27  ;;  %v2528_v16 = vld [vmem:[#allocation2 + $0x78] sm:$0xff] }
 0x1e5   : > { %2638 = vst.msk [vmem:[%s3957_s16 + $0x1e8] sm:$0xff] %vm436_vm0, %v2574_v21  ;;  %v2544_v5 = vld [vmem:[#allocation2 + $0xf8] sm:$0xff] }
 0x1e6   : > { %2592 = vst.msk [vmem:[%s3957_s16 + $0x78] sm:$0xff] %vm436_vm0, %v2528_v16  ;;  %v2559_v9 = vld [vmem:[#allocation2 + $0x170] sm:$0xff] }
 0x1e7   : > { %2608 = vst.msk [vmem:[%s3957_s16 + $0xf8] sm:$0xff] %vm436_vm0, %v2544_v5  ;;  %v2575_v17 = vld [vmem:[#allocation2 + $0x1f0] sm:$0xff] }
 0x1e8   : > { %2623 = vst.msk [vmem:[%s3957_s16 + $0x170] sm:$0xff] %vm436_vm0, %v2559_v9 }
 0x1e9   : > { %2639 = vst.msk [vmem:[%s3957_s16 + $0x1f0] sm:$0xff] %vm436_vm0, %v2575_v17 }
 0x1ea   : > { %v2560_v18 = vld [vmem:[#allocation2 + $0x178] sm:$0xff] }
 0x1eb   : > { %2624 = vst.msk [vmem:[%s3957_s16 + $0x178] sm:$0xff] %vm436_vm0, %v2560_v18  ;;  %v2576_v20 = vld [vmem:[#allocation2 + $0x1f8] sm:$0xff] }
 0x1ec   : > { %2640 = vst.msk [vmem:[%s3957_s16 + $0x1f8] sm:$0xff] %vm436_vm0, %v2576_v20 }
 0x1ed PF: > { %s15_s20 = sadd.s32 1, %s3143_s20   ;;  %s4205_s18 = smov %s3139_s19 }
 0x1ee   : > { %p12_p5 = scmp.ge.s32.totalorder %s15_s20, 4   ;;  %s4206_s19 = smov %s4208_s21 }
 0x1f0   :  { %14 = sbr.rel (!%p12_p5) target bundleno = 2 (0x2), region = 90 }

</bundles_post_ra>
